<compile_context>
chip_gen: v7x
topology: tpu7x:2x2x1
jax: 0.10.0
libtpu: 0.0.40
codegen_flags: <defaults>
</compile_context>

<pallas_src>
import jax
import jax.numpy as jnp
from jax.experimental import pallas as pl
from jax.experimental.pallas import tpu as pltpu

_LANE = 128


# ----------------------------------------------------------------------------
# Pallas kernel: G packed graphs per grid step, entire forward fused in VMEM.
# ----------------------------------------------------------------------------
def gdp_forward_kernel(
    x_ref,      # (GN, F)     packed node features
    src_ref,    # (1, GE)     int32 edge sources (slot-offset), -1 = padding
    dst_ref,    # (1, GE)     int32 edge destinations (slot-offset), -1 = pad
    wcat1_ref,  # (F, H+2)    [W1 | W1@ad1^T | W1@as1^T]
    b1_ref,     # (1, H)
    wcat2_ref,  # (H, H+2)    [W2 | W2@ad2^T | W2@as2^T]
    b2_ref,     # (1, H)
    wl_ref,     # (H, T)      final Linear weight (compact, no lane padding)
    bl_ref,     # (1, T)
    out_ref,    # (GN, T)
):
    x = x_ref[...]
    gn = x.shape[0]
    ge = src_ref.shape[1]
    hdim = b1_ref.shape[1]

    # ---- block-diagonal adjacency bias, built once, shared by both layers --
    node_ids = jax.lax.broadcasted_iota(jnp.int32, (gn, ge), 0)
    hot_dst = (node_ids == dst_ref[...]).astype(jnp.bfloat16)   # exact 0/1
    hot_src = (node_ids == src_ref[...]).astype(jnp.bfloat16)
    # adj_cnt[i, j] = #edges j -> i   (bf16 MXU: hot_dst @ hot_src^T, f32 acc)
    adj_cnt = jax.lax.dot_general(
        hot_dst, hot_src, (((1,), (1,)), ((), ())),
        preferred_element_type=jnp.float32)                     # (GN, GN)
    row = jax.lax.broadcasted_iota(jnp.int32, (gn, gn), 0)
    col = jax.lax.broadcasted_iota(jnp.int32, (gn, gn), 1)
    mask = jnp.logical_or(adj_cnt > 0.5, row == col)            # + self loops
    adj_bias = jnp.where(mask, 0.0, -1e30)                      # (GN, GN) f32

    ones_col = jnp.ones((gn, 1), jnp.float32)                   # hoisted

    def gat_layer(h, wcat, bias):
        # single fused projection: hw | <hw,att_dst> | <hw,att_src>
        hwa = jnp.dot(h, wcat, preferred_element_type=jnp.float32)  # (GN,H+2)
        hw = hwa[:, :hdim]
        a_dst = hwa[:, hdim:hdim + 1]                            # (GN, 1)
        a_src = hwa[:, hdim + 1:hdim + 2]                        # (GN, 1)
        # e_src[i, j] = a_src[j]: K=1 MXU outer product, no XLU transpose.
        e_src = jax.lax.dot_general(
            ones_col, a_src, (((1,), (1,)), ((), ())),
            preferred_element_type=jnp.float32)                  # (GN, GN)
        e = a_dst + e_src
        e = jnp.maximum(e, 0.2 * e)                              # LeakyReLU(0.2)
        e = e + adj_bias                                         # additive mask
        e = e - jnp.max(e, axis=-1, keepdims=True)
        p = jnp.exp(e)                 # masked entries underflow to exactly 0
        alpha = p / jnp.sum(p, axis=-1, keepdims=True)
        return jnp.dot(alpha, hw, preferred_element_type=jnp.float32) + bias

    # conv1 -> relu -> (dropout = identity in eval)
    h1 = gat_layer(x, wcat1_ref[...], b1_ref[...])
    h1 = jnp.maximum(h1, 0.0)
    # conv2
    h2 = gat_layer(h1, wcat2_ref[...], b2_ref[...])
    # linear -> relu (compact T-lane output, no write amplification)
    y = jnp.dot(h2, wl_ref[...], preferred_element_type=jnp.float32) + bl_ref[...]
    out_ref[...] = jnp.maximum(y, 0.0)


# ----------------------------------------------------------------------------
# Wrapper: pack G graphs per grid step, offset edge ids per pack slot so the
# in-kernel adjacency is block-diagonal, fold attention vectors into the
# projection weight, launch one "parallel" grid step per pack.
# ----------------------------------------------------------------------------
def baseline_gdp_forward(x, edge_index, params):
    single = x.ndim == 2
    if single:
        x = x[None]
        edge_index = edge_index[None]
    x = x.astype(jnp.float32)

    b, n, f_in = x.shape
    h = params["w1"].shape[1]
    t = params["wl"].shape[1]
    e = edge_index.shape[2]

    # Pack G graphs per step so the stacked node dim approaches 128 rows.
    g = max(1, min(_LANE // n, b)) if n <= _LANE else 1
    b_pad = -(-b // g) * g
    n_packs = b_pad // g
    gn = g * n

    # ---- pack node features -------------------------------------------------
    if b_pad > b:
        x = jnp.concatenate(
            [x, jnp.zeros((b_pad - b, n, f_in), jnp.float32)], axis=0)
    x_packed = x.reshape(n_packs, gn, f_in)

    # ---- pack edges: per-slot node-id offsets => block-diagonal adjacency ---
    src = edge_index[:, 0, :].astype(jnp.int32)
    dst = edge_index[:, 1, :].astype(jnp.int32)
    if b_pad > b:
        fill = jnp.full((b_pad - b, e), -1, jnp.int32)
        src = jnp.concatenate([src, fill], axis=0)
        dst = jnp.concatenate([dst, fill], axis=0)
    slot = (jnp.arange(b_pad, dtype=jnp.int32) % g)[:, None]
    src = jnp.where(src >= 0, src + slot * n, -1).reshape(n_packs, g * e)
    dst = jnp.where(dst >= 0, dst + slot * n, -1).reshape(n_packs, g * e)
    ge = max(_LANE, -(-(g * e) // _LANE) * _LANE)       # lane-align edge dim
    if ge > g * e:
        fill = jnp.full((n_packs, ge - g * e), -1, jnp.int32)
        src = jnp.concatenate([src, fill], axis=1)
        dst = jnp.concatenate([dst, fill], axis=1)
    src = src[:, None, :]                               # (n_packs, 1, GE)
    dst = dst[:, None, :]

    # ---- VMEM residency guard (quadratic intermediates) ---------------------
    # adj_bias/e/p (GN^2 f32 each) + bf16 one-hots (GN*GE each).
    # TODO(synk): row-tile the dst dimension (2nd grid axis) for large graphs;
    # re-derive the cap per generation (v7x: 64 MiB physical / 32 MiB scoped).
    vmem_est = 3 * gn * gn * 4 + 2 * gn * ge * 2
    if vmem_est > 12 * 2 ** 20:
        raise NotImplementedError(
            "graph too large for the fully VMEM-resident path; dst row-tiling "
            "not implemented")

    # ---- fold attention vectors into the projection weight ------------------
    # <hW, att> = h @ (W @ att^T): one matmul yields hw, a_dst and a_src.
    wcat1 = jnp.concatenate(
        [params["w1"], params["w1"] @ params["ad1"].T,
         params["w1"] @ params["as1"].T], axis=1)        # (F, H+2)
    wcat2 = jnp.concatenate(
        [params["w2"], params["w2"] @ params["ad2"].T,
         params["w2"] @ params["as2"].T], axis=1)        # (H, H+2)
    # TODO(synk): for large N/H/E also cast h/hw/alpha to bf16 at the matmul
    # inputs (f32 accumulate); kept f32 here to match the f32 reference tightly
    # at these tiny shapes where the MXU gain is negligible.

    def full(shape):
        return pl.BlockSpec(shape, lambda i: (0,) * len(shape))

    in_specs = [
        pl.BlockSpec((None, gn, f_in), lambda i: (i, 0, 0)),
        pl.BlockSpec((None, 1, ge), lambda i: (i, 0, 0)),
        pl.BlockSpec((None, 1, ge), lambda i: (i, 0, 0)),
        full((f_in, h + 2)), full((1, h)),
        full((h, h + 2)), full((1, h)),
        full((h, t)), full((1, t)),
    ]

    out = pl.pallas_call(
        gdp_forward_kernel,
        out_shape=jax.ShapeDtypeStruct((n_packs, gn, t), jnp.float32),
        grid=(n_packs,),
        in_specs=in_specs,
        out_specs=pl.BlockSpec((None, gn, t), lambda i: (i, 0, 0)),
        compiler_params=pltpu.CompilerParams(
            dimension_semantics=("parallel",)),
    )(x_packed, src, dst,
      wcat1, params["b1"], wcat2, params["b2"],
      params["wl"], params["bl"])

    out = out.reshape(b_pad, n, t)[:b]
    return out[0] if single else out


# ----------------------------------------------------------------------------
# Pure-JAX reference (same math) for the correctness check.
# ----------------------------------------------------------------------------
def reference_forward(x, edge_index, params):
    n = x.shape[0]
    src, dst = edge_index[0], edge_index[1]
    adj = jnp.zeros((n, n), jnp.float32).at[dst, src].set(1.0)
    adj = adj.at[jnp.arange(n), jnp.arange(n)].set(1.0)

    def gat(hh, w, a_s, a_d, bb):
        hw = hh @ w
        ee = (hw * a_d).sum(-1, keepdims=True) + ((hw * a_s).sum(-1, keepdims=True)).T
        ee = jnp.where(ee > 0, ee, 0.2 * ee)
        ee = jnp.where(adj > 0, ee, -1e30)
        ee = ee - ee.max(-1, keepdims=True)
        p = jnp.exp(ee) * (adj > 0)
        alpha = p / p.sum(-1, keepdims=True)
        return alpha @ hw + bb

    hid = jnp.maximum(
        gat(x, params["w1"], params["as1"], params["ad1"], params["b1"]), 0.0)
    hid = gat(hid, params["w2"], params["as2"], params["ad2"], params["b2"])
    return jnp.maximum(hid @ params["wl"] + params["bl"], 0.0)


def init_params(key, num_features=3, hidden_size=32, target_size=1):
    ks = jax.random.split(key, 8)
    glorot = lambda k, shape: (
        jax.random.uniform(k, shape, jnp.float32, -1.0, 1.0)
        * jnp.sqrt(6.0 / (shape[0] + shape[-1]))
    )
    return {
        "w1": glorot(ks[0], (num_features, hidden_size)),
        "as1": glorot(ks[1], (1, hidden_size)),
        "ad1": glorot(ks[2], (1, hidden_size)),
        "b1": jnp.zeros((1, hidden_size), jnp.float32),
        "w2": glorot(ks[3], (hidden_size, hidden_size)),
        "as2": glorot(ks[4], (1, hidden_size)),
        "ad2": glorot(ks[5], (1, hidden_size)),
        "b2": jnp.zeros((1, hidden_size), jnp.float32),
        "wl": glorot(ks[6], (hidden_size, target_size)),
        "bl": jnp.zeros((1, target_size), jnp.float32),
    }


if __name__ == "__main__":
    key = jax.random.PRNGKey(0)
    k_x, k_e, k_p = jax.random.split(key, 3)

    batch, num_nodes, num_features, hidden_size, target_size = 10, 16, 3, 32, 1
    num_edges = 40

    x = jax.random.normal(k_x, (batch, num_nodes, num_features), jnp.float32)
    edge_index = jax.random.randint(
        k_e, (batch, 2, num_edges), 0, num_nodes, jnp.int32)
    params = init_params(k_p, num_features, hidden_size, target_size)

    # Batched path (10 graphs -> 2 packs of 8 slots, 128-row MXU tiles).
    out = baseline_gdp_forward(x, edge_index, params)
    out = jax.block_until_ready(out)
    assert out.shape == (batch, num_nodes, target_size)

    ref = jnp.stack(
        [reference_forward(x[i], edge_index[i], params) for i in range(batch)])
    assert jnp.allclose(out, ref, rtol=1e-2, atol=2e-3), "batched mismatch vs reference"

    # Single-graph path.
    out1 = baseline_gdp_forward(x[0], edge_index[0], params)
    out1 = jax.block_until_ready(out1)
    assert out1.shape == (num_nodes, target_size)
    assert jnp.allclose(out1, ref[0], rtol=1e-2, atol=2e-3), "single mismatch vs reference"

    print("KERNEL_OK")
</pallas_src>

<mosaic_0001>
module attributes {stable_mosaic.version = 11 : i64} {
  func.func @gdp_forward_kernel(%arg0: i32, %arg1: memref<1x128x3xf32, #tpu.memory_space<vmem>>, %arg2: memref<1x1x384xi32, #tpu.memory_space<vmem>>, %arg3: memref<1x1x384xi32, #tpu.memory_space<vmem>>, %arg4: memref<3x34xf32, #tpu.memory_space<vmem>>, %arg5: memref<1x32xf32, #tpu.memory_space<vmem>>, %arg6: memref<32x34xf32, #tpu.memory_space<vmem>>, %arg7: memref<1x32xf32, #tpu.memory_space<vmem>>, %arg8: memref<32x1xf32, #tpu.memory_space<vmem>>, %arg9: memref<1x1xf32, #tpu.memory_space<vmem>>, %arg10: memref<1x128x1xf32, #tpu.memory_space<vmem>>) attributes {dimension_semantics = [#tpu.dimension_semantics<parallel>], iteration_bounds = array<i64: 2>, scalar_prefetch = 0 : i64, scratch_operands = 0 : i64, tpu.core_type = #tpu.core_type<tc>, window_params = [{transform_indices = @transform_0, window_bounds = array<i64: 1, 128, 3>}, {transform_indices = @transform_1, window_bounds = array<i64: 1, 1, 384>}, {transform_indices = @transform_2, window_bounds = array<i64: 1, 1, 384>}, {pipeline_mode = #tpu.pipeline_mode<synchronous>, transform_indices = @transform_3, window_bounds = array<i64: 3, 34>}, {pipeline_mode = #tpu.pipeline_mode<synchronous>, transform_indices = @transform_4, window_bounds = array<i64: 1, 32>}, {pipeline_mode = #tpu.pipeline_mode<synchronous>, transform_indices = @transform_5, window_bounds = array<i64: 32, 34>}, {pipeline_mode = #tpu.pipeline_mode<synchronous>, transform_indices = @transform_6, window_bounds = array<i64: 1, 32>}, {pipeline_mode = #tpu.pipeline_mode<synchronous>, transform_indices = @transform_7, window_bounds = array<i64: 32, 1>}, {pipeline_mode = #tpu.pipeline_mode<synchronous>, transform_indices = @transform_8, window_bounds = array<i64: 1, 1>}, {transform_indices = @transform_9, window_bounds = array<i64: 1, 128, 1>}]} {
    %c0 = arith.constant 0 : index
    %c0_0 = arith.constant 0 : index
    %c0_1 = arith.constant 0 : index
    %0 = vector.load %arg1[%c0, %c0_0, %c0_1] : memref<1x128x3xf32, #tpu.memory_space<vmem>>, vector<1x128x3xf32>
    %1 = vector.shape_cast %0 : vector<1x128x3xf32> to vector<128x3xf32>
    %2 = tpu.iota {dimensions = array<i32: 0>} : vector<128x384xi32>
    %c0_2 = arith.constant 0 : index
    %c0_3 = arith.constant 0 : index
    %c0_4 = arith.constant 0 : index
    %3 = vector.load %arg3[%c0_2, %c0_3, %c0_4] : memref<1x1x384xi32, #tpu.memory_space<vmem>>, vector<1x1x384xi32>
    %4 = vector.shape_cast %3 : vector<1x1x384xi32> to vector<1x384xi32>
    %5 = vector.broadcast %4 : vector<1x384xi32> to vector<128x384xi32>
    %6 = arith.cmpi eq, %2, %5 : vector<128x384xi32>
    %7 = arith.extui %6 : vector<128x384xi1> to vector<128x384xi32>
    %8 = arith.sitofp %7 : vector<128x384xi32> to vector<128x384xf32>
    %9 = arith.truncf %8 : vector<128x384xf32> to vector<128x384xbf16>
    %c0_5 = arith.constant 0 : index
    %c0_6 = arith.constant 0 : index
    %c0_7 = arith.constant 0 : index
    %10 = vector.load %arg2[%c0_5, %c0_6, %c0_7] : memref<1x1x384xi32, #tpu.memory_space<vmem>>, vector<1x1x384xi32>
    %11 = vector.shape_cast %10 : vector<1x1x384xi32> to vector<1x384xi32>
    %12 = vector.broadcast %11 : vector<1x384xi32> to vector<128x384xi32>
    %13 = arith.cmpi eq, %2, %12 : vector<128x384xi32>
    %14 = arith.extui %13 : vector<128x384xi1> to vector<128x384xi32>
    %15 = arith.sitofp %14 : vector<128x384xi32> to vector<128x384xf32>
    %16 = arith.truncf %15 : vector<128x384xf32> to vector<128x384xbf16>
    %cst = arith.constant dense<0.000000e+00> : vector<128x128xf32>
    %17 = tpu.matmul %9, %16, %cst {dimension_numbers = #tpu.dot_dimension_numbers<[1], [1], [0], [0], [0, 0, 1, 0], [], []>} : vector<128x384xbf16>, vector<128x384xbf16>, vector<128x128xf32> -> vector<128x128xf32>
    %18 = tpu.iota {dimensions = array<i32: 0>} : vector<128x128xi32>
    %19 = tpu.iota {dimensions = array<i32: 1>} : vector<128x128xi32>
    %cst_8 = arith.constant 5.000000e-01 : f32
    %20 = vector.broadcast %cst_8 : f32 to vector<128x128xf32>
    %21 = arith.cmpf ogt, %17, %20 : vector<128x128xf32>
    %22 = arith.cmpi eq, %18, %19 : vector<128x128xi32>
    %23 = arith.ori %21, %22 : vector<128x128xi1>
    %cst_9 = arith.constant 0.000000e+00 : f32
    %cst_10 = arith.constant -1.000000e+30 : f32
    %24 = vector.broadcast %cst_9 : f32 to vector<128x128xf32>
    %25 = vector.broadcast %cst_10 : f32 to vector<128x128xf32>
    %26 = arith.select %23, %24, %25 : vector<128x128xi1>, vector<128x128xf32>
    %cst_11 = arith.constant 1.000000e+00 : f32
    %27 = vector.broadcast %cst_11 : f32 to vector<128x1xf32>
    %c0_12 = arith.constant 0 : index
    %c0_13 = arith.constant 0 : index
    %28 = vector.load %arg4[%c0_12, %c0_13] : memref<3x34xf32, #tpu.memory_space<vmem>>, vector<3x34xf32>
    %c0_14 = arith.constant 0 : index
    %c0_15 = arith.constant 0 : index
    %29 = vector.load %arg5[%c0_14, %c0_15] : memref<1x32xf32, #tpu.memory_space<vmem>>, vector<1x32xf32>
    %cst_16 = arith.constant dense<0.000000e+00> : vector<128x34xf32>
    %30 = tpu.matmul %1, %28, %cst_16 {dimension_numbers = #tpu.dot_dimension_numbers<[1], [0], [0], [1], [0, 0, 1, 1], [], []>} : vector<128x3xf32>, vector<3x34xf32>, vector<128x34xf32> -> vector<128x34xf32>
    %31 = vector.extract_strided_slice %30 {offsets = [0, 0], sizes = [128, 32], strides = [1, 1]} : vector<128x34xf32> to vector<128x32xf32>
    %32 = vector.extract_strided_slice %30 {offsets = [0, 32], sizes = [128, 1], strides = [1, 1]} : vector<128x34xf32> to vector<128x1xf32>
    %33 = vector.extract_strided_slice %30 {offsets = [0, 33], sizes = [128, 1], strides = [1, 1]} : vector<128x34xf32> to vector<128x1xf32>
    %cst_17 = arith.constant dense<0.000000e+00> : vector<128x128xf32>
    %34 = tpu.matmul %27, %33, %cst_17 {dimension_numbers = #tpu.dot_dimension_numbers<[1], [1], [0], [0], [0, 0, 1, 0], [], []>} : vector<128x1xf32>, vector<128x1xf32>, vector<128x128xf32> -> vector<128x128xf32>
    %35 = vector.broadcast %32 : vector<128x1xf32> to vector<128x128xf32>
    %36 = arith.addf %35, %34 : vector<128x128xf32>
    %cst_18 = arith.constant 2.000000e-01 : f32
    %37 = vector.broadcast %cst_18 : f32 to vector<128x128xf32>
    %38 = arith.mulf %37, %36 : vector<128x128xf32>
    %39 = arith.maximumf %36, %38 : vector<128x128xf32>
    %40 = arith.addf %39, %26 : vector<128x128xf32>
    %cst_19 = arith.constant dense<0xFF800000> : vector<128xf32>
    %41 = vector.multi_reduction <maximumf>, %40, %cst_19 [1] : vector<128x128xf32> to vector<128xf32>
    %42 = vector.shape_cast %41 : vector<128xf32> to vector<128x1xf32>
    %43 = vector.broadcast %42 : vector<128x1xf32> to vector<128x128xf32>
    %44 = arith.subf %40, %43 : vector<128x128xf32>
    %45 = math.exp %44 : vector<128x128xf32>
    %cst_20 = arith.constant dense<0.000000e+00> : vector<128xf32>
    %46 = vector.multi_reduction <add>, %45, %cst_20 [1] : vector<128x128xf32> to vector<128xf32>
    %47 = vector.shape_cast %46 : vector<128xf32> to vector<128x1xf32>
    %48 = vector.broadcast %47 : vector<128x1xf32> to vector<128x128xf32>
    %49 = arith.divf %45, %48 : vector<128x128xf32>
    %cst_21 = arith.constant dense<0.000000e+00> : vector<128x32xf32>
    %50 = tpu.matmul %49, %31, %cst_21 {dimension_numbers = #tpu.dot_dimension_numbers<[1], [0], [0], [1], [0, 0, 1, 1], [], []>} : vector<128x128xf32>, vector<128x32xf32>, vector<128x32xf32> -> vector<128x32xf32>
    %51 = vector.broadcast %29 : vector<1x32xf32> to vector<128x32xf32>
    %52 = arith.addf %50, %51 : vector<128x32xf32>
    %cst_22 = arith.constant 0.000000e+00 : f32
    %53 = vector.broadcast %cst_22 : f32 to vector<128x32xf32>
    %54 = arith.maximumf %52, %53 : vector<128x32xf32>
    %c0_23 = arith.constant 0 : index
    %c0_24 = arith.constant 0 : index
    %55 = vector.load %arg6[%c0_23, %c0_24] : memref<32x34xf32, #tpu.memory_space<vmem>>, vector<32x34xf32>
    %c0_25 = arith.constant 0 : index
    %c0_26 = arith.constant 0 : index
    %56 = vector.load %arg7[%c0_25, %c0_26] : memref<1x32xf32, #tpu.memory_space<vmem>>, vector<1x32xf32>
    %cst_27 = arith.constant dense<0.000000e+00> : vector<128x34xf32>
    %57 = tpu.matmul %54, %55, %cst_27 {dimension_numbers = #tpu.dot_dimension_numbers<[1], [0], [0], [1], [0, 0, 1, 1], [], []>} : vector<128x32xf32>, vector<32x34xf32>, vector<128x34xf32> -> vector<128x34xf32>
    %58 = vector.extract_strided_slice %57 {offsets = [0, 0], sizes = [128, 32], strides = [1, 1]} : vector<128x34xf32> to vector<128x32xf32>
    %59 = vector.extract_strided_slice %57 {offsets = [0, 32], sizes = [128, 1], strides = [1, 1]} : vector<128x34xf32> to vector<128x1xf32>
    %60 = vector.extract_strided_slice %57 {offsets = [0, 33], sizes = [128, 1], strides = [1, 1]} : vector<128x34xf32> to vector<128x1xf32>
    %cst_28 = arith.constant dense<0.000000e+00> : vector<128x128xf32>
    %61 = tpu.matmul %27, %60, %cst_28 {dimension_numbers = #tpu.dot_dimension_numbers<[1], [1], [0], [0], [0, 0, 1, 0], [], []>} : vector<128x1xf32>, vector<128x1xf32>, vector<128x128xf32> -> vector<128x128xf32>
    %62 = vector.broadcast %59 : vector<128x1xf32> to vector<128x128xf32>
    %63 = arith.addf %62, %61 : vector<128x128xf32>
    %cst_29 = arith.constant 2.000000e-01 : f32
    %64 = vector.broadcast %cst_29 : f32 to vector<128x128xf32>
    %65 = arith.mulf %64, %63 : vector<128x128xf32>
    %66 = arith.maximumf %63, %65 : vector<128x128xf32>
    %67 = arith.addf %66, %26 : vector<128x128xf32>
    %cst_30 = arith.constant dense<0xFF800000> : vector<128xf32>
    %68 = vector.multi_reduction <maximumf>, %67, %cst_30 [1] : vector<128x128xf32> to vector<128xf32>
    %69 = vector.shape_cast %68 : vector<128xf32> to vector<128x1xf32>
    %70 = vector.broadcast %69 : vector<128x1xf32> to vector<128x128xf32>
    %71 = arith.subf %67, %70 : vector<128x128xf32>
    %72 = math.exp %71 : vector<128x128xf32>
    %cst_31 = arith.constant dense<0.000000e+00> : vector<128xf32>
    %73 = vector.multi_reduction <add>, %72, %cst_31 [1] : vector<128x128xf32> to vector<128xf32>
    %74 = vector.shape_cast %73 : vector<128xf32> to vector<128x1xf32>
    %75 = vector.broadcast %74 : vector<128x1xf32> to vector<128x128xf32>
    %76 = arith.divf %72, %75 : vector<128x128xf32>
    %cst_32 = arith.constant dense<0.000000e+00> : vector<128x32xf32>
    %77 = tpu.matmul %76, %58, %cst_32 {dimension_numbers = #tpu.dot_dimension_numbers<[1], [0], [0], [1], [0, 0, 1, 1], [], []>} : vector<128x128xf32>, vector<128x32xf32>, vector<128x32xf32> -> vector<128x32xf32>
    %78 = vector.broadcast %56 : vector<1x32xf32> to vector<128x32xf32>
    %79 = arith.addf %77, %78 : vector<128x32xf32>
    %c0_33 = arith.constant 0 : index
    %c0_34 = arith.constant 0 : index
    %80 = vector.load %arg8[%c0_33, %c0_34] : memref<32x1xf32, #tpu.memory_space<vmem>>, vector<32x1xf32>
    %cst_35 = arith.constant dense<0.000000e+00> : vector<128x1xf32>
    %81 = tpu.matmul %79, %80, %cst_35 {dimension_numbers = #tpu.dot_dimension_numbers<[1], [0], [0], [1], [0, 0, 1, 1], [], []>} : vector<128x32xf32>, vector<32x1xf32>, vector<128x1xf32> -> vector<128x1xf32>
    %c0_36 = arith.constant 0 : index
    %c0_37 = arith.constant 0 : index
    %82 = vector.load %arg9[%c0_36, %c0_37] : memref<1x1xf32, #tpu.memory_space<vmem>>, vector<1x1xf32>
    %83 = vector.broadcast %82 : vector<1x1xf32> to vector<128x1xf32>
    %84 = arith.addf %81, %83 : vector<128x1xf32>
    %cst_38 = arith.constant 0.000000e+00 : f32
    %85 = vector.broadcast %cst_38 : f32 to vector<128x1xf32>
    %86 = arith.maximumf %84, %85 : vector<128x1xf32>
    %c0_39 = arith.constant 0 : index
    %c0_40 = arith.constant 0 : index
    %c0_41 = arith.constant 0 : index
    %87 = vector.load %arg10[%c0_39, %c0_40, %c0_41] : memref<1x128x1xf32, #tpu.memory_space<vmem>>, vector<1x128x1xf32>
    %88 = vector.shape_cast %87 : vector<1x128x1xf32> to vector<128x1xf32>
    %89 = vector.shape_cast %86 : vector<128x1xf32> to vector<1x128x1xf32>
    tpu.vector_store %arg10[%c0_39, %c0_40, %c0_41], %89 {strides = array<i32>} : memref<1x128x1xf32, #tpu.memory_space<vmem>>, vector<1x128x1xf32>,
    return
  }
  func.func @transform_0(%arg0: i32) -> (i32, i32, i32) {
    %c0_i32 = arith.constant 0 : i32
    %c0_i32_0 = arith.constant 0 : i32
    %c0_i32_1 = arith.constant 0 : i32
    return %arg0, %c0_i32, %c0_i32_0 : i32, i32, i32
  }
  func.func @transform_1(%arg0: i32) -> (i32, i32, i32) {
    %c0_i32 = arith.constant 0 : i32
    %c0_i32_0 = arith.constant 0 : i32
    %c0_i32_1 = arith.constant 0 : i32
    return %arg0, %c0_i32, %c0_i32_0 : i32, i32, i32
  }
  func.func @transform_2(%arg0: i32) -> (i32, i32, i32) {
    %c0_i32 = arith.constant 0 : i32
    %c0_i32_0 = arith.constant 0 : i32
    %c0_i32_1 = arith.constant 0 : i32
    return %arg0, %c0_i32, %c0_i32_0 : i32, i32, i32
  }
  func.func @transform_3(%arg0: i32) -> (i32, i32) {
    %c0_i32 = arith.constant 0 : i32
    %c0_i32_0 = arith.constant 0 : i32
    %c0_i32_1 = arith.constant 0 : i32
    return %c0_i32, %c0_i32_0 : i32, i32
  }
  func.func @transform_4(%arg0: i32) -> (i32, i32) {
    %c0_i32 = arith.constant 0 : i32
    %c0_i32_0 = arith.constant 0 : i32
    %c0_i32_1 = arith.constant 0 : i32
    return %c0_i32, %c0_i32_0 : i32, i32
  }
  func.func @transform_5(%arg0: i32) -> (i32, i32) {
    %c0_i32 = arith.constant 0 : i32
    %c0_i32_0 = arith.constant 0 : i32
    %c0_i32_1 = arith.constant 0 : i32
    return %c0_i32, %c0_i32_0 : i32, i32
  }
  func.func @transform_6(%arg0: i32) -> (i32, i32) {
    %c0_i32 = arith.constant 0 : i32
    %c0_i32_0 = arith.constant 0 : i32
    %c0_i32_1 = arith.constant 0 : i32
    return %c0_i32, %c0_i32_0 : i32, i32
  }
  func.func @transform_7(%arg0: i32) -> (i32, i32) {
    %c0_i32 = arith.constant 0 : i32
    %c0_i32_0 = arith.constant 0 : i32
    %c0_i32_1 = arith.constant 0 : i32
    return %c0_i32, %c0_i32_0 : i32, i32
  }
  func.func @transform_8(%arg0: i32) -> (i32, i32) {
    %c0_i32 = arith.constant 0 : i32
    %c0_i32_0 = arith.constant 0 : i32
    %c0_i32_1 = arith.constant 0 : i32
    return %c0_i32, %c0_i32_0 : i32, i32
  }
  func.func @transform_9(%arg0: i32) -> (i32, i32, i32) {
    %c0_i32 = arith.constant 0 : i32
    %c0_i32_0 = arith.constant 0 : i32
    %c0_i32_1 = arith.constant 0 : i32
    return %arg0, %c0_i32, %c0_i32_0 : i32, i32, i32
  }
}

</mosaic_0001>

<bundles_post_ra>
// kernel: tpu_custom_call.1
= control target key start
LH: loop header
LB: loop body
LE: loop exit
PB: predicated region body
PF: predicated region fallthrough
CT: control target
= control target key end

     0   :  { %s4405_s11 = smov 0   ;;  %s5710_s0 = inlined_call_operand.vmem [shape: f32[2,128,3], index: 0, kind: input, shape index: {}]   ;;  %s5711_s1 = inlined_call_operand.vmem [shape: s32[2,1,384], index: 1, kind: input, shape index: {}]   ;;  %s5712_s2 = inlined_call_operand.vmem [shape: s32[2,1,384], index: 2, kind: input, shape index: {}]   ;;  %s5713_s3 = inlined_call_operand.vmem [shape: f32[3,34], index: 3, kind: input, shape index: {}]   ;;  %s5714_s4 = inlined_call_operand.vmem [shape: f32[1,32], index: 4, kind: input, shape index: {}]   ;;  %s5715_s5 = inlined_call_operand.vmem [shape: f32[32,34], index: 5, kind: input, shape index: {}]   ;;  %s5716_s6 = inlined_call_operand.vmem [shape: f32[1,32], index: 6, kind: input, shape index: {}]   ;;  %s5717_s7 = inlined_call_operand.vmem [shape: f32[32,1], index: 7, kind: input, shape index: {}]   ;;  %s5718_s8 = inlined_call_operand.<no memory space> [shape: f32[1,1], index: 8, kind: input, shape index: {}]   ;;  %s5719_s9 = inlined_call_operand.vmem [shape: f32[2,128,1], index: 9, kind: output, shape index: {}]  }
   0x1   :  { %v14_v0 = vstv %s5718_s8 }
   0x2   :  { %15 = vst [vmem:[#allocation2] sm:$0x1] %v14_v0 }
   0x3 LB: > { %s3055_s12 = sadd.s32 4294967295, %s4345_s11   ;;  %p3059_p0 = scmp.ge.s32.totalorder %s4345_s11, 1  ;;  %s4345_s11 = sphi %s4405_s11, %s21_s11  }
   0x4   : > { %p307_p1 = scmp.lt.s32.totalorder %s4345_s11, 3 }
   0x6   : > { %p308_p2 = pnand %p3059_p0, %p307_p1 }
   0x7   : > { %p351_p3 = scmp.lt.s32.totalorder (!%p308_p2), %s3055_s12, 1  ;;  %v386_v1 = vlaneseq (!%p308_p2)  ;;  %v4347_v13 = vmov (!%p308_p2), 1.0|1.0   ;;  %v1025_v35 = vld [vmem:[%s5713_s3] sm:$0x7] (!%p308_p2)  ;;  %v4348_v52 = vmov (!%p308_p2), 32  }
   0x8   : > { %311 = sbr.rel (%p308_p2) target bundleno = 2666 (0xa6a), region = 56  ;;  %4169 = vset.pattern.permute.xlu0 (!%p308_p2), %v4348_v52  ;;  %4170 = vset.pattern.permute.xlu1 (!%p308_p2), %v4348_v52  ;;  %s4349_s25 = smov (!%p308_p2), 95  }
   0x9   : > { %v4416_v2 = vshrl.u32 (!%p308_p2), %v386_v1, 7 }
   0xb   : > { %v410_v3 = vsub.s32 (!%p308_p2), 1, %v4416_v2  ;;  %v414_v4 = vsub.s32 (!%p308_p2), 2, %v4416_v2  ;;  %v406_v5 = vsub.s32 (!%p308_p2), 0, %v4416_v2  ;;  %v4428_v6 = vadd.s32 (!%p308_p2), 8, %v4416_v2 }
   0xc   : > { %v4431_v8 = vadd.s32 (!%p308_p2), 16, %v4416_v2  ;;  %v4434_v9 = vadd.s32 (!%p308_p2), 24, %v4416_v2  ;;  %v4470_v14 = vadd.s32 (!%p308_p2), 32, %v4416_v2  ;;  %v4473_v15 = vadd.s32 (!%p308_p2), 40, %v4416_v2 }
   0xd   : > { %v4497_v17 = vadd.s32 (!%p308_p2), 48, %v4416_v2  ;;  %v4500_v18 = vadd.s32 (!%p308_p2), 56, %v4416_v2  ;;  %v4528_v20 = vadd.s32 (!%p308_p2), 64, %v4416_v2  ;;  %v4531_v21 = vadd.s32 (!%p308_p2), 72, %v4416_v2 }
   0xe   : > { %v4580_v26 = vadd.s32 (!%p308_p2), 80, %v4416_v2  ;;  %v4583_v27 = vadd.s32 (!%p308_p2), 88, %v4416_v2  ;;  %v4612_v29 = vadd.s32 (!%p308_p2), 96, %v4416_v2  ;;  %v4615_v30 = vadd.s32 (!%p308_p2), 104, %v4416_v2 }
   0xf   : > { %s5761_s12 = smov (!%p351_p3, %s3055_s12), 1  ;;  %v4642_v32 = vadd.s32 112, %v4416_v2  ;;  %v4645_v33 = vadd.s32 120, %v4416_v2 }
  0x10   : > { %s4115_s8 = smul.u32 3, %s5761_s12  ;;  %s3374_s21 = sshll.u32 %s5761_s12, 7 }
  0x11   : > { %s4767_s24 = scalar_lea.vmem %s5710_s0, %s3374_s21  ;;  %s5673_s29 = scalar_lea.vmem %s5719_s9, %s3374_s21 }
  0x12   : > { %s359_s15 = scalar_lea.vmem %s5711_s1, %s4115_s8  ;;  %s363_s18 = scalar_lea.vmem %s5712_s2, %s4115_s8  ;;  %v370_v36 = vld [vmem:[%s4767_s24] sm:$0xff]  ;;  %v371_v37 = vld [vmem:[%s4767_s24 + $0x8] sm:$0xff]  ;;  %v372_v38 = vld [vmem:[%s4767_s24 + $0x10] sm:$0xff] }
  0x13   : > { %v584_v7 = vld [vmem:[%s359_s15] sm:$0x7]  ;;  %v373_v39 = vld [vmem:[%s4767_s24 + $0x18] sm:$0xff]  ;;  %v375_v41 = vld [vmem:[%s4767_s24 + $0x28] sm:$0xff] }
  0x14   : > { %v4438_v10 = vrot.slane %v584_v7, %v410_v3  ;;  %v4442_v11 = vrot.slane %v584_v7, %v414_v4  ;;  %v4446_v12 = vrot.slane %v584_v7, %v406_v5  ;;  %v4525_v19 = vld [vmem:[%s363_s18] sm:$0x7]  ;;  %v376_v42 = vld [vmem:[%s4767_s24 + $0x30] sm:$0xff]  ;;  %v377_v43 = vld [vmem:[%s4767_s24 + $0x38] sm:$0xff] }
  0x15   : > { %v4540_v23 = vrot.slane %v4525_v19, %v410_v3  ;;  %v4549_v24 = vrot.slane %v4525_v19, %v414_v4  ;;  %v4680_v34 = vrot.slane %v4525_v19, %v406_v5  ;;  %v374_v40 = vld [vmem:[%s4767_s24 + $0x20] sm:$0xff]  ;;  %v379_v45 = vld [vmem:[%s4767_s24 + $0x48] sm:$0xff]  ;;  %v380_v46 = vld [vmem:[%s4767_s24 + $0x50] sm:$0xff] }
  0x16   : > { %vm598_vm0 = vcmp.eq.s32.totalorder %v4416_v2, %v4438_v10  ;;  %vm601_vm1 = vcmp.eq.s32.totalorder %v4428_v6, %v4438_v10  ;;  %vm599_vm2 = vcmp.eq.s32.totalorder %v4416_v2, %v4442_v11  ;;  %vm602_vm3 = vcmp.eq.s32.totalorder %v4428_v6, %v4442_v11  ;;  %v378_v44 = vld [vmem:[%s4767_s24 + $0x40] sm:$0xff]  ;;  %v381_v47 = vld [vmem:[%s4767_s24 + $0x58] sm:$0xff]  ;;  %v383_v49 = vld [vmem:[%s4767_s24 + $0x68] sm:$0xff] }
  0x17   : > { %vm3160_vm4 = vmpackc.low %vm601_vm1, %vm598_vm0  ;;  %vm597_vm5 = vcmp.eq.s32.totalorder %v4416_v2, %v4446_v12  ;;  %vm600_vm6 = vcmp.eq.s32.totalorder %v4428_v6, %v4446_v12  ;;  %vm604_vm7 = vcmp.eq.s32.totalorder %v4431_v8, %v4438_v10  ;;  %vm607_vm8 = vcmp.eq.s32.totalorder %v4434_v9, %v4438_v10  ;;  %v382_v48 = vld [vmem:[%s4767_s24 + $0x60] sm:$0xff]  ;;  %v384_v50 = vld [vmem:[%s4767_s24 + $0x70] sm:$0xff] }
  0x18   : > { %3161 = vmatprep.subr.msk.bf16.mxu0 %vm3160_vm4, %v4347_v13  ;;  %vm3224_vm9 = vmpackc.low %vm602_vm3, %vm599_vm2  ;;  %vm605_vm10 = vcmp.eq.s32.totalorder %v4431_v8, %v4442_v11  ;;  %vm608_vm11 = vcmp.eq.s32.totalorder %v4434_v9, %v4442_v11  ;;  %vm603_vm15 = vcmp.eq.s32.totalorder %v4431_v8, %v4446_v12  ;;  %vm606_vm0 = vcmp.eq.s32.totalorder %v4434_v9, %v4446_v12  ;;  %v385_v51 = vld [vmem:[%s4767_s24 + $0x78] sm:$0xff] }
  0x19   : > { %3577 = vmatprep.subr.msk.bf16.mxu1 %vm3224_vm9, %v4347_v13  ;;  %vm3162_vm12 = vmpackc.low %vm600_vm6, %vm597_vm5  ;;  %vm610_vm1 = vcmp.eq.s32.totalorder %v4470_v14, %v4438_v10  ;;  %vm613_vm2 = vcmp.eq.s32.totalorder %v4473_v15, %v4438_v10  ;;  %vm611_vm3 = vcmp.eq.s32.totalorder %v4470_v14, %v4442_v11  ;;  %vm614_vm4 = vcmp.eq.s32.totalorder %v4473_v15, %v4442_v11 }
  0x1a   : > { %3163 = vmatpush1.bf16.xpose.msk.msra.mxu0 %vm3162_vm12, %v4347_v13  ;;  %3578 = vmatpush3.bf16.xpose.msk.msra.mxu1 %vm3224_vm9, %v4347_v13  ;;  %vm3164_vm13 = vmpackc.low %vm607_vm8, %vm604_vm7  ;;  %vm609_vm8 = vcmp.eq.s32.totalorder %v4470_v14, %v4446_v12  ;;  %vm612_vm9 = vcmp.eq.s32.totalorder %v4473_v15, %v4446_v12  ;;  %vm617_vm12 = vcmp.eq.s32.totalorder %v4497_v17, %v4442_v11 }
  0x1b   : > { %3165 = vmatprep.subr.msk.bf16.mxu0 %vm3164_vm13, %v4347_v13  ;;  %vm3226_vm14 = vmpackc.low %vm608_vm11, %vm605_vm10  ;;  %vm616_vm10 = vcmp.eq.s32.totalorder %v4497_v17, %v4438_v10  ;;  %vm619_vm11 = vcmp.eq.s32.totalorder %v4500_v18, %v4438_v10  ;;  %vm620_vm13 = vcmp.eq.s32.totalorder %v4500_v18, %v4442_v11 }
  0x1c   : > { %3579 = vmatprep.subr.msk.bf16.mxu1 %vm3226_vm14, %v4347_v13  ;;  %vm3166_vm5 = vmpackc.low %vm606_vm0, %vm603_vm15 }
  0x1d   : > { %vm3168_vm6 = vmpackc.low %vm613_vm2, %vm610_vm1  ;;  %vm615_vm1 = vcmp.eq.s32.totalorder %v4497_v17, %v4446_v12  ;;  %vm618_vm2 = vcmp.eq.s32.totalorder %v4500_v18, %v4446_v12 }
  0x1e   : > { %vm4492_vm7 = vmpackc.low %vm614_vm4, %vm611_vm3  ;;  %vm622_vm3 = vcmp.eq.s32.totalorder %v4528_v20, %v4438_v10  ;;  %vm625_vm4 = vcmp.eq.s32.totalorder %v4531_v21, %v4438_v10 }
  0x1f   : > { %vm3172_vm15 = vmpackc.low %vm619_vm11, %vm616_vm10  ;;  %vm418_vm11 = vcmp.eq.s32.totalorder %v4416_v2, %v4549_v24 }
  0x20   : > { %vm4533_vm0 = vmpackc.low %vm620_vm13, %vm617_vm12  ;;  %vm421_vm12 = vcmp.eq.s32.totalorder %v4428_v6, %v4549_v24 }
  0x21   : > { %vm3176_vm10 = vmpackc.low %vm625_vm4, %vm622_vm3  ;;  %vm628_vm3 = vcmp.eq.s32.totalorder %v4580_v26, %v4438_v10  ;;  %vm631_vm4 = vcmp.eq.s32.totalorder %v4583_v27, %v4438_v10 }
  0x22   : > { %3167 = vmatpush1.bf16.xpose.msk.msra.mxu0 %vm3166_vm5, %v4347_v13  ;;  %3580 = vmatpush3.bf16.xpose.msk.msra.mxu1 %vm3226_vm14, %v4347_v13  ;;  %vm3170_vm14 = vmpackc.low %vm612_vm9, %vm609_vm8  ;;  %vm623_vm5 = vcmp.eq.s32.totalorder %v4528_v20, %v4442_v11  ;;  %vm420_vm9 = vcmp.eq.s32.totalorder %v4428_v6, %v4540_v23 }
  0x23   : > { %3169 = vmatprep.subr.msk.bf16.mxu0 %vm3168_vm6, %v4347_v13  ;;  %3581 = vmatprep.subr.msk.bf16.mxu1 %vm4492_vm7, %v4347_v13  ;;  %vm626_vm6 = vcmp.eq.s32.totalorder %v4531_v21, %v4442_v11  ;;  %vm3174_vm8 = vmpackc.low %vm618_vm2, %vm615_vm1  ;;  %vm621_vm1 = vcmp.eq.s32.totalorder %v4528_v20, %v4446_v12  ;;  %vm624_vm2 = vcmp.eq.s32.totalorder %v4531_v21, %v4446_v12 }
  0x24   : > { %vm4575_vm13 = vmpackc.low %vm626_vm6, %vm623_vm5  ;;  %vm632_vm5 = vcmp.eq.s32.totalorder %v4583_v27, %v4442_v11 }
  0x25   : > { %vm3178_vm6 = vmpackc.low %vm624_vm2, %vm621_vm1 }
  0x2a   : > { %3171 = vmatpush1.bf16.xpose.msk.msra.mxu0 %vm3170_vm14, %v4347_v13  ;;  %3582 = vmatpush3.bf16.xpose.msk.msra.mxu1 %vm4492_vm7, %v4347_v13  ;;  %vm417_vm7 = vcmp.eq.s32.totalorder %v4416_v2, %v4540_v23 }
  0x2b   : > { %3173 = vmatprep.subr.msk.bf16.mxu0 %vm3172_vm15, %v4347_v13  ;;  %3583 = vmatprep.subr.msk.bf16.mxu1 %vm4533_vm0, %v4347_v13  ;;  %vm3192_vm14 = vmpackc.low %vm420_vm9, %vm417_vm7  ;;  %vm627_vm9 = vcmp.eq.s32.totalorder %v4580_v26, %v4446_v12 }
  0x2c   : > { %3193 = vmatprep.mubr.msk.bf16.mxu0 %vm3192_vm14, %v4347_v13  ;;  %vm3240_vm15 = vmpackc.low %vm421_vm12, %vm418_vm11  ;;  %vm634_vm11 = vcmp.eq.s32.totalorder %v4612_v29, %v4438_v10  ;;  %vm637_vm12 = vcmp.eq.s32.totalorder %v4615_v30, %v4438_v10  ;;  %vm638_vm14 = vcmp.eq.s32.totalorder %v4615_v30, %v4442_v11 }
  0x2d   : > { %3593 = vmatprep.mubr.msk.bf16.mxu1 %vm3240_vm15, %v4347_v13  ;;  %vm3184_vm1 = vmpackc.low %vm637_vm12, %vm634_vm11  ;;  %vm639_vm11 = vcmp.eq.s32.totalorder %v4642_v32, %v4446_v12  ;;  %vm642_vm12 = vcmp.eq.s32.totalorder %v4645_v33, %v4446_v12 }
  0x32   : > { %3175 = vmatpush1.bf16.xpose.msk.msra.mxu0 %vm3174_vm8, %v4347_v13  ;;  %3584 = vmatpush3.bf16.xpose.msk.msra.mxu1 %vm4533_vm0, %v4347_v13  ;;  %vm629_vm0 = vcmp.eq.s32.totalorder %v4580_v26, %v4442_v11  ;;  %vm3180_vm8 = vmpackc.low %vm631_vm4, %vm628_vm3  ;;  %vm633_vm3 = vcmp.eq.s32.totalorder %v4612_v29, %v4446_v12  ;;  %vm636_vm4 = vcmp.eq.s32.totalorder %v4615_v30, %v4446_v12 }
  0x33   : > { %3177 = vmatprep.subr.msk.bf16.mxu0 %vm3176_vm10, %v4347_v13  ;;  %3585 = vmatprep.subr.msk.bf16.mxu1 %vm4575_vm13, %v4347_v13  ;;  %vm4607_vm7 = vmpackc.low %vm632_vm5, %vm629_vm0  ;;  %vm630_vm10 = vcmp.eq.s32.totalorder %v4583_v27, %v4446_v12  ;;  %vm640_vm0 = vcmp.eq.s32.totalorder %v4642_v32, %v4438_v10  ;;  %vm643_vm5 = vcmp.eq.s32.totalorder %v4645_v33, %v4438_v10 }
  0x34   : > { %vm3182_vm15 = vmpackc.low %vm630_vm10, %vm627_vm9 }
  0x35   : > { %vm3188_vm9 = vmpackc.low %vm643_vm5, %vm640_vm0  ;;  %vm426_vm0 = vcmp.eq.s32.totalorder %v4434_v9, %v4540_v23 }
  0x3a   : > { %3179 = vmatpush1.bf16.xpose.msk.msra.mxu0 %vm3178_vm6, %v4347_v13  ;;  %3586 = vmatpush3.bf16.xpose.msk.msra.mxu1 %vm4575_vm13, %v4347_v13  ;;  %vm635_vm13 = vcmp.eq.s32.totalorder %v4612_v29, %v4442_v11  ;;  %vm641_vm6 = vcmp.eq.s32.totalorder %v4642_v32, %v4442_v11 }
  0x3b   : > { %3181 = vmatprep.subr.msk.bf16.mxu0 %vm3180_vm8, %v4347_v13  ;;  %3587 = vmatprep.subr.msk.bf16.mxu1 %vm4607_vm7, %v4347_v13  ;;  %vm4637_vm2 = vmpackc.low %vm638_vm14, %vm635_vm13  ;;  %vm644_vm8 = vcmp.eq.s32.totalorder %v4645_v33, %v4442_v11  ;;  %vm1076_vm14 = vcmask 1042432  }
  0x3c   : > { %vm3238_vm10 = vmpackc.low %vm644_vm8, %vm641_vm6  ;;  %vm430_vm6 = vcmp.eq.s32.totalorder %v4470_v14, %v4549_v24  ;;  %vm433_vm8 = vcmp.eq.s32.totalorder %v4473_v15, %v4549_v24 }
  0x3d   : > { %vm3190_vm13 = vmpackc.low %vm642_vm12, %vm639_vm11  ;;  %vm422_vm11 = vcmp.eq.s32.totalorder %v4431_v8, %v4680_v34  ;;  %vm425_vm12 = vcmp.eq.s32.totalorder %v4434_v9, %v4680_v34 }
  0x42   : > { %3183 = vmatpush1.bf16.xpose.msk.msra.mxu0 %vm3182_vm15, %v4347_v13  ;;  %3588 = vmatpush3.bf16.xpose.msk.msra.mxu1 %vm4607_vm7, %v4347_v13  ;;  %vm3186_vm7 = vmpackc.low %vm636_vm4, %vm633_vm3  ;;  %vm416_vm15 = vcmp.eq.s32.totalorder %v4416_v2, %v4680_v34  ;;  %vm427_vm3 = vcmp.eq.s32.totalorder %v4434_v9, %v4549_v24  ;;  %vm423_vm4 = vcmp.eq.s32.totalorder %v4431_v8, %v4540_v23 }
  0x43   : > { %3185 = vmatprep.subr.msk.bf16.mxu0 %vm3184_vm1, %v4347_v13  ;;  %3589 = vmatprep.subr.msk.bf16.mxu1 %vm4637_vm2, %v4347_v13  ;;  %vm419_vm1 = vcmp.eq.s32.totalorder %v4428_v6, %v4680_v34 }
  0x44   : > { %vm3194_vm5 = vmpackc.low %vm419_vm1, %vm416_vm15  ;;  %vm439_vm15 = vcmp.eq.s32.totalorder %v4500_v18, %v4549_v24  ;;  %vm429_vm1 = vcmp.eq.s32.totalorder %v4470_v14, %v4540_v23 }
  0x4a   : > { %3187 = vmatpush1.bf16.xpose.msk.msra.mxu0 %vm3186_vm7, %v4347_v13  ;;  %3590 = vmatpush3.bf16.xpose.msk.msra.mxu1 %vm4637_vm2, %v4347_v13  ;;  %vm424_vm2 = vcmp.eq.s32.totalorder %v4431_v8, %v4549_v24 }
  0x4b   : > { %3189 = vmatprep.subr.msk.bf16.mxu0 %vm3188_vm9, %v4347_v13  ;;  %3591 = vmatprep.subr.msk.bf16.mxu1 %vm3238_vm10, %v4347_v13  ;;  %vm3242_vm7 = vmpackc.low %vm427_vm3, %vm424_vm2  ;;  %vm432_vm2 = vcmp.eq.s32.totalorder %v4473_v15, %v4540_v23 }
  0x4c   : > { %vm3196_vm9 = vmpackc.low %vm426_vm0, %vm423_vm4  ;;  %vm445_vm4 = vcmp.eq.s32.totalorder %v4531_v21, %v4549_v24 }
  0x4d   : > { %vm3198_vm3 = vmpackc.low %vm425_vm12, %vm422_vm11  ;;  %vm435_vm11 = vcmp.eq.s32.totalorder %v4497_v17, %v4540_v23  ;;  %vm438_vm12 = vcmp.eq.s32.totalorder %v4500_v18, %v4540_v23 }
  0x52   : > { %3191 = vmatpush1.bf16.xpose.msk.msra.mxu0 %vm3190_vm13, %v4347_v13  ;;  %3592 = vmatpush3.bf16.xpose.msk.msra.mxu1 %vm3238_vm10, %v4347_v13  ;;  %vm3244_vm10 = vmpackc.low %vm433_vm8, %vm430_vm6  ;;  %vm436_vm13 = vcmp.eq.s32.totalorder %v4497_v17, %v4549_v24  ;;  %vm428_vm8 = vcmp.eq.s32.totalorder %v4470_v14, %v4680_v34 }
  0x53   : > { %3609 = vmatprep.subr.msk.mxu1 %vm1076_vm14, %v1025_v35  ;;  %vm3246_vm0 = vmpackc.low %vm439_vm15, %vm436_vm13  ;;  %vm454_vm15 = vcmp.eq.s32.totalorder %v4612_v29, %v4549_v24 }
  0x59   : > { %3195 = vmatmul.mubr.msk.bf16.vlgmr.msra.gmra.mrb[0].mxu0 %vm3194_vm5, %v4347_v13  ;;  %3594 = vmatmul.mubr.msk.bf16.vlgmr.msra.gmra.mrb[0].mxu1 %vm3242_vm7, %v4347_v13  ;;  %vm3200_vm5 = vmpackc.low %vm432_vm2, %vm429_vm1  ;;  %vm431_vm7 = vcmp.eq.s32.totalorder %v4473_v15, %v4680_v34  ;;  %vm457_vm1 = vcmp.eq.s32.totalorder %v4615_v30, %v4549_v24 }
  0x5a   : > { %3610 = vmatpush3.msk.msra.mxu1 %vm1076_vm14, %v1025_v35  ;;  %3197 = vmatprep.mubr.msk.bf16.mxu0 %vm3196_vm9, %v4347_v13  ;;  %vm442_vm14 = vcmp.eq.s32.totalorder %v4528_v20, %v4549_v24  ;;  %vm448_vm9 = vcmp.eq.s32.totalorder %v4580_v26, %v4549_v24  ;;  %vm3202_vm13 = vmpackc.low %vm431_vm7, %vm428_vm8  ;;  %vm441_vm8 = vcmp.eq.s32.totalorder %v4528_v20, %v4540_v23 }
  0x5b   : > { %3597 = vmatprep.mubr.msk.bf16.mxu1 %vm3244_vm10, %v4347_v13  ;;  %vm3248_vm6 = vmpackc.low %vm445_vm4, %vm442_vm14  ;;  %vm451_vm10 = vcmp.eq.s32.totalorder %v4583_v27, %v4549_v24  ;;  %vm434_vm4 = vcmp.eq.s32.totalorder %v4497_v17, %v4680_v34  ;;  %vm444_vm7 = vcmp.eq.s32.totalorder %v4531_v21, %v4540_v23 }
  0x5c   : > { %vm3250_vm2 = vmpackc.low %vm451_vm10, %vm448_vm9 }
  0x5d   : > { %vm3252_vm14 = vmpackc.low %vm457_vm1, %vm454_vm15  ;;  %vm443_vm15 = vcmp.eq.s32.totalorder %v4531_v21, %v4680_v34  ;;  %vm447_vm1 = vcmp.eq.s32.totalorder %v4580_v26, %v4540_v23 }
  0x61   : > { %3199 = vmatmul.mubr.msk.bf16.gmra.mrb[4].mxu0 %vm3198_vm3, %v4347_v13  ;;  %3598 = vmatmul.mubr.msk.bf16.gmra.mrb[4].mxu1 %vm3246_vm0, %v4347_v13  ;;  %vm3204_vm3 = vmpackc.low %vm438_vm12, %vm435_vm11  ;;  %vm437_vm0 = vcmp.eq.s32.totalorder %v4500_v18, %v4680_v34  ;;  %vm1027_vm12 = vcmask 23552  }
  0x62   : > { %3201 = vmatprep.mubr.msk.bf16.mxu0 %vm3200_vm5, %v4347_v13  ;;  %3601 = vmatprep.mubr.msk.bf16.mxu1 %vm3248_vm6, %v4347_v13  ;;  %vm460_vm5 = vcmp.eq.s32.totalorder %v4642_v32, %v4549_v24  ;;  %vm463_vm6 = vcmp.eq.s32.totalorder %v4645_v33, %v4549_v24  ;;  %vm3206_vm9 = vmpackc.low %vm437_vm0, %vm434_vm4  ;;  %vm446_vm4 = vcmp.eq.s32.totalorder %v4580_v26, %v4680_v34 }
  0x63   : > { %vm3254_vm10 = vmpackc.low %vm463_vm6, %vm460_vm5  ;;  %vm449_vm0 = vcmp.eq.s32.totalorder %v4583_v27, %v4680_v34  ;;  %vm453_vm5 = vcmp.eq.s32.totalorder %v4612_v29, %v4540_v23  ;;  %vm456_vm6 = vcmp.eq.s32.totalorder %v4615_v30, %v4540_v23 }
  0x64   : > { %vm3208_vm11 = vmpackc.low %vm444_vm7, %vm441_vm8 }
  0x65   : > { %vm3214_vm8 = vmpackc.low %vm449_vm0, %vm446_vm4 }
  0x66   : > { %vm3216_vm7 = vmpackc.low %vm456_vm6, %vm453_vm5 }
  0x69   : > { %3203 = vmatmul.mubr.msk.bf16.gmra.mrb[8].mxu0 %vm3202_vm13, %v4347_v13  ;;  %3602 = vmatmul.mubr.msk.bf16.gmra.mrb[8].mxu1 %vm3250_vm2, %v4347_v13  ;;  %vm440_vm13 = vcmp.eq.s32.totalorder %v4528_v20, %v4680_v34  ;;  %vm450_vm2 = vcmp.eq.s32.totalorder %v4583_v27, %v4540_v23 }
  0x6a   : > { %3205 = vmatprep.mubr.msk.bf16.mxu0 %vm3204_vm3, %v4347_v13  ;;  %3605 = vmatprep.mubr.msk.bf16.mxu1 %vm3252_vm14, %v4347_v13  ;;  %vm3210_vm3 = vmpackc.low %vm443_vm15, %vm440_vm13  ;;  %vm462_vm13 = vcmp.eq.s32.totalorder %v4645_v33, %v4540_v23 }
  0x6b   : > { %vm3212_vm14 = vmpackc.low %vm450_vm2, %vm447_vm1  ;;  %vm458_vm2 = vcmp.eq.s32.totalorder %v4642_v32, %v4680_v34 }
  0x71   : > { %3207 = vmatmul.mubr.msk.bf16.gmra.mrb[12].mxu0 %vm3206_vm9, %v4347_v13  ;;  %3606 = vmatmul.mubr.msk.bf16.gmra.mrb[12].mxu1 %vm3254_vm10, %v4347_v13  ;;  %vm452_vm9 = vcmp.eq.s32.totalorder %v4612_v29, %v4680_v34  ;;  %vm455_vm10 = vcmp.eq.s32.totalorder %v4615_v30, %v4680_v34 }
  0x72   : > { %3209 = vmatprep.mubr.msk.bf16.mxu0 %vm3208_vm11, %v4347_v13  ;;  %3611 = vmatprep.mubr.msk.f32.mxu1 %vm1027_vm12, %v370_v36  ;;  %vm459_vm11 = vcmp.eq.s32.totalorder %v4642_v32, %v4540_v23  ;;  %vm3218_vm15 = vmpackc.low %vm455_vm10, %vm452_vm9 }
  0x73   : > { %vm3220_vm1 = vmpackc.low %vm462_vm13, %vm459_vm11 }
  0x79   : > { %3211 = vmatmul.mubr.msk.bf16.gmra.mrb[16].mxu0 %vm3210_vm3, %v4347_v13  ;;  %3612 = vmatmul.mubr.msk.f32.vlgmr.msra.gmra.mrb[16].mxu1 %vm1027_vm12, %v371_v37  ;;  %vm461_vm3 = vcmp.eq.s32.totalorder %v4645_v33, %v4680_v34 }
  0x7a   : > { %3614 = vmatprep.mubr.msk.f32.mxu1 %vm1027_vm12, %v372_v38  ;;  %3213 = vmatprep.mubr.msk.bf16.mxu0 %vm3212_vm14, %v4347_v13  ;;  %vm3222_vm14 = vmpackc.low %vm461_vm3, %vm458_vm2 }
  0x7d   : > { %3615 = vmatmul.mubr.msk.f32.gmra.mrb[18].mxu1 %vm1027_vm12, %v373_v39 }
  0x7e   : > { %3617 = vmatprep.mubr.msk.f32.mxu1 %vm1027_vm12, %v374_v40 }
  0x81   : > { %3215 = vmatmul.mubr.msk.bf16.gmra.mrb[20].mxu0 %vm3214_vm8, %v4347_v13  ;;  %3618 = vmatmul.mubr.msk.f32.gmra.mrb[20].mxu1 %vm1027_vm12, %v375_v41 }
  0x82   : > { %3620 = vmatprep.mubr.msk.f32.mxu1 %vm1027_vm12, %v376_v42  ;;  %3217 = vmatprep.mubr.msk.bf16.mxu0 %vm3216_vm7, %v4347_v13 }
  0x85   : > { %3621 = vmatmul.mubr.msk.f32.gmra.mrb[22].mxu1 %vm1027_vm12, %v377_v43 }
  0x86   : > { %3623 = vmatprep.mubr.msk.f32.mxu1 %vm1027_vm12, %v378_v44 }
  0x89   : > { %3219 = vmatmul.mubr.msk.bf16.gmra.mrb[24].mxu0 %vm3218_vm15, %v4347_v13  ;;  %3624 = vmatmul.mubr.msk.f32.gmra.mrb[24].mxu1 %vm1027_vm12, %v379_v45 }
  0x8a   : > { %3626 = vmatprep.mubr.msk.f32.mxu1 %vm1027_vm12, %v380_v46  ;;  %3221 = vmatprep.mubr.msk.bf16.mxu0 %vm3220_vm1, %v4347_v13 }
  0x8d   : > { %3627 = vmatmul.mubr.msk.f32.gmra.mrb[26].mxu1 %vm1027_vm12, %v381_v47 }
  0x8e   : > { %3629 = vmatprep.mubr.msk.f32.mxu1 %vm1027_vm12, %v382_v48 }
  0x91   : > { %3223 = vmatmul.mubr.msk.bf16.gmra.mrb[28].mxu0 %vm3222_vm14, %v4347_v13  ;;  %3630 = vmatmul.mubr.msk.f32.gmra.mrb[28].mxu1 %vm1027_vm12, %v383_v49 }
  0x92   : > { %3632 = vmatprep.mubr.msk.f32.mxu1 %vm1027_vm12, %v384_v50 }
  0x95   : > { %3633 = vmatmul.mubr.msk.f32.gmra.mrb[30].mxu1 %vm1027_vm12, %v385_v51  ;;  %vm1273_vm12 = vcmask 7168  }
  0x96   : > { %vm4909_vm4 = vmpackc.low %vm1273_vm12, %vm1273_vm12 }
 0x12c   : > { %v3595_v53 = vpop.f32.mrb[0].mxu1  ;;  %v799_v54 = vpop.f32.mrb[0].mxu0 }
 0x12d   : > { %v896_v55 = vpop.f32.mrb[1].mxu1  ;;  %v801_v56 = vpop.f32.mrb[1].mxu0 }
 0x12e   : > { %v4839_v57 = vadd.f32 %v896_v55, %v799_v54  ;;  %v3596_v58 = vpop.f32.mrb[2].mxu1  ;;  %v802_v59 = vpop.f32.mrb[2].mxu0 }
 0x12f   : > { %v899_v60 = vpop.f32.mrb[3].mxu1  ;;  %v804_v61 = vpop.f32.mrb[3].mxu0 }
 0x130   : > { %v4841_v62 = vadd.f32 %v899_v60, %v802_v59  ;;  %vm961_vm6 = vcmp.gt.f32.partialorder %v4839_v57, 0.5 }
 0x132   : > { %vm962_vm0 = vcmp.gt.f32.partialorder %v4841_v62, 0.5 }
 0x134   : > { %v807_v63 = vpop.f32.mrb[4].mxu0  ;;  %v3599_v0 = vpop.f32.mrb[4].mxu1 }
 0x135   : > { %v4843_v3 = vadd.f32 %v3595_v53, %v807_v63  ;;  %v809_v4 = vpop.f32.mrb[5].mxu0  ;;  %v912_v5 = vpop.f32.mrb[5].mxu1 }
 0x136   : > { %v810_v7 = vpop.f32.mrb[6].mxu0  ;;  %v3600_v10 = vpop.f32.mrb[6].mxu1 }
 0x137   : > { %v4845_v11 = vadd.f32 %v3596_v58, %v810_v7  ;;  %v915_v12 = vpop.f32.mrb[7].mxu1  ;;  %v812_v13 = vpop.f32.mrb[7].mxu0  ;;  %vm963_vm13 = vcmp.gt.f32.partialorder %v4843_v3, 0.5 }
 0x139   : > { %vm964_vm10 = vcmp.gt.f32.partialorder %v4845_v11, 0.5 }
 0x13c   : > { %v815_v16 = vpop.f32.mrb[8].mxu0  ;;  %v3603_v19 = vpop.f32.mrb[8].mxu1 }
 0x13d   : > { %v4847_v22 = vadd.f32 %v912_v5, %v815_v16  ;;  %v817_v23 = vpop.f32.mrb[9].mxu0  ;;  %v928_v24 = vpop.f32.mrb[9].mxu1 }
 0x13e   : > { %v818_v25 = vpop.f32.mrb[10].mxu0  ;;  %v3604_v28 = vpop.f32.mrb[10].mxu1 }
 0x13f   : > { %v4849_v31 = vadd.f32 %v915_v12, %v818_v25  ;;  %v931_v34 = vpop.f32.mrb[11].mxu1  ;;  %v820_v35 = vpop.f32.mrb[11].mxu0 }
 0x141   : > { %vm966_vm3 = vcmp.gt.f32.partialorder %v4849_v31, 0.5 }
 0x144   : > { %v823_v36 = vpop.f32.mrb[12].mxu0  ;;  %v4851_v37 = vpop.f32.mrb[12].mxu1 }
 0x145   : > { %v4853_v38 = vadd.f32 %v3599_v0, %v823_v36  ;;  %v825_v39 = vpop.f32.mrb[13].mxu0  ;;  %v944_v40 = vpop.f32.mrb[13].mxu1 }
 0x146   : > { %v826_v41 = vpop.f32.mrb[14].mxu0  ;;  %v4855_v42 = vpop.f32.mrb[14].mxu1 }
 0x147   : > { %v4857_v43 = vadd.f32 %v3600_v10, %v826_v41  ;;  %v947_v44 = vpop.f32.mrb[15].mxu1  ;;  %v828_v45 = vpop.f32.mrb[15].mxu0 }
 0x14c   : > { %v831_v46 = vpop.f32.mrb[16].mxu0  ;;  %v4859_v47 = vpop.f32.mrb[16].mxu1 }
 0x14d   : > { %v4861_v48 = vadd.f32 %v928_v24, %v831_v46  ;;  %v833_v49 = vpop.f32.mrb[17].mxu0  ;;  %v4863_v50 = vpop.f32.mrb[17].mxu1 }
 0x14e   : > { %v3971_v51 = vpack.c.bf16 %v4859_v47, %v4863_v50  ;;  %v834_v52 = vpop.f32.mrb[18].mxu0  ;;  %v4129_v53 = vpack.i.bf16 %v4859_v47, %v4863_v50 }
 0x14f   : > { %v4869_v54 = vadd.f32 %v931_v34, %v834_v52  ;;  %v836_v55 = vpop.f32.mrb[19].mxu0 }
 0x150   : > { %4130 = vrot.lane.b32.xlu0 %v4129_v53, %s4349_s25  ;;  %3972 = vmatprep.subr.bf16.mxu1 %v3971_v51  ;;  %v4872_v56 = vpop.f32.mrb[18].mxu1 }
 0x151   : > { %3974 = vmatpush3.bf16.msra.mxu1 %v3971_v51  ;;  %v4874_v58 = vpop.f32.mrb[19].mxu1 }
 0x152   : > { %v4134_v59 = vpack.i.bf16 %v4872_v56, %v4874_v58  ;;  %v3975_v60 = vpack.c.bf16 %v4872_v56, %v4874_v58 }
 0x154   : > { %v839_v61 = vpop.f32.mrb[20].mxu0  ;;  %3976 = vmatprep.subr.bf16.mxu1 %v3975_v60  ;;  %4135 = vrot.lane.b32.xlu0 %v4134_v59, %s4349_s25  ;;  %v3619_v63 = vpop.f32.mrb[20].mxu1 }
 0x155   : > { %v4881_v0 = vadd.f32 %v3603_v19, %v839_v61  ;;  %v841_v4 = vpop.f32.mrb[21].mxu0  ;;  %3978 = vmatpush3.bf16.msra.mxu1 %v3975_v60  ;;  %v1166_v5 = vpop.f32.mrb[21].mxu1 }
 0x156   : > { %v842_v7 = vpop.f32.mrb[22].mxu0  ;;  %v3979_v10 = vpack.c.bf16 %v3619_v63, %v1166_v5  ;;  %v4139_v12 = vpack.i.bf16 %v3619_v63, %v1166_v5 }
 0x157   : > { %v4883_v13 = vadd.f32 %v3604_v28, %v842_v7  ;;  %v844_v16 = vpop.f32.mrb[23].mxu0 }
 0x158   : > { %v3622_v23 = vpop.f32.mrb[22].mxu1  ;;  %3980 = vmatprep.subr.bf16.mxu1 %v3979_v10  ;;  %4140 = vrot.lane.b32.xlu1 %v4139_v12, %s4349_s25 }
 0x159   : > { %v1176_v24 = vpop.f32.mrb[23].mxu1  ;;  %3982 = vmatpush3.bf16.msra.mxu1 %v3979_v10 }
 0x15a   : > { %v4144_v25 = vpack.i.bf16 %v3622_v23, %v1176_v24  ;;  %v3983_v34 = vpack.c.bf16 %v3622_v23, %v1176_v24 }
 0x15c   : > { %v847_v35 = vpop.f32.mrb[24].mxu0  ;;  %v3625_v19 = vpop.f32.mrb[24].mxu1  ;;  %4145 = vrot.lane.b32.xlu1 %v4144_v25, %s4349_s25  ;;  %3984 = vmatprep.subr.bf16.mxu1 %v3983_v34 }
 0x15d   : > { %v4887_v36 = vadd.f32 %v944_v40, %v847_v35  ;;  %v849_v39 = vpop.f32.mrb[25].mxu0  ;;  %v1186_v41 = vpop.f32.mrb[25].mxu1  ;;  %3986 = vmatpush3.bf16.msra.mxu1 %v3983_v34 }
 0x15e   : > { %v850_v28 = vpop.f32.mrb[26].mxu0  ;;  %v4149_v45 = vpack.i.bf16 %v3625_v19, %v1186_v41  ;;  %v3987_v46 = vpack.c.bf16 %v3625_v19, %v1186_v41 }
 0x15f   : > { %v4889_v49 = vadd.f32 %v947_v44, %v850_v28  ;;  %v852_v51 = vpop.f32.mrb[27].mxu0 }
 0x160   : > { %v3628_v52 = vpop.f32.mrb[26].mxu1  ;;  %4150 = vrot.lane.b32.xlu0 %v4149_v45, %s4349_s25  ;;  %3988 = vmatprep.subr.bf16.mxu1 %v3987_v46 }
 0x161   : > { %v1196_v53 = vpop.f32.mrb[27].mxu1  ;;  %3990 = vmatpush3.bf16.msra.mxu1 %v3987_v46 }
 0x162   : > { %v4154_v55 = vpack.i.bf16 %v3628_v52, %v1196_v53  ;;  %v3991_v59 = vpack.c.bf16 %v3628_v52, %v1196_v53 }
 0x164   : > { %v855_v60 = vpop.f32.mrb[28].mxu0  ;;  %v3631_v40 = vpop.f32.mrb[28].mxu1  ;;  %4155 = vrot.lane.b32.xlu1 %v4154_v55, %s4349_s25  ;;  %3992 = vmatprep.subr.bf16.mxu1 %v3991_v59 }
 0x165   : > { %v4894_v61 = vadd.f32 %v4851_v37, %v855_v60  ;;  %v857_v4 = vpop.f32.mrb[29].mxu0  ;;  %v1206_v44 = vpop.f32.mrb[29].mxu1  ;;  %3994 = vmatpush3.bf16.msra.mxu1 %v3991_v59  ;;  %v4350_v37 = vmov 1.0  }
 0x166   : > { %v4159_v7 = vpack.i.bf16 %v3631_v40, %v1206_v44  ;;  %v3995_v10 = vpack.c.bf16 %v3631_v40, %v1206_v44  ;;  %v858_v12 = vpop.f32.mrb[30].mxu0  ;;  %3667 = vmatprep.mubr.msk.f32.mxu0 %vm1273_vm12, %v4350_v37 }
 0x167   : > { %v4897_v16 = vadd.f32 %v4855_v42, %v858_v12  ;;  %v860_v25 = vpop.f32.mrb[31].mxu0 }
 0x168   : > { %4160 = vrot.lane.b32.xlu0 %v4159_v7, %s4349_s25  ;;  %v3634_v34 = vpop.f32.mrb[30].mxu1  ;;  %3996 = vmatprep.subr.bf16.mxu1 %v3995_v10 }
 0x169   : > { %v1216_v35 = vpop.f32.mrb[31].mxu1  ;;  %3998 = vmatpush3.bf16.msra.mxu1 %v3995_v10 }
 0x16a   : > { %v4164_v39 = vpack.i.bf16 %v3634_v34, %v1216_v35  ;;  %v3999_v28 = vpack.c.bf16 %v3634_v34, %v1216_v35 }
 0x16c   : > { %1455 = vperm.xlu0 %4169, %v4863_v50   ;;  %4165 = vrot.lane.b32.xlu1 %v4164_v39, %s4349_s25 }
 0x16d   : > { %4000 = vmatprep.subr.bf16.mxu1 %v3999_v28 }
 0x16e   : > { %4002 = vmatpush3.bf16.msra.mxu1 %v3999_v28 }
 0x170   : > { %1467 = vperm.xlu0 %4169, %v4872_v56   ;;  %1459 = vperm.xlu1 %4170, %v4859_v47  }
 0x174   : > { %1475 = vperm.xlu0 %4169, %v3619_v63   ;;  %1463 = vperm.xlu1 %4170, %v4874_v58  }
 0x178   : > { %1483 = vperm.xlu0 %4169, %v3622_v23   ;;  %1471 = vperm.xlu1 %4170, %v1166_v5  }
 0x17c   : > { %1491 = vperm.xlu0 %4169, %v3625_v19   ;;  %1479 = vperm.xlu1 %4170, %v1176_v24  }
 0x180   : > { %1499 = vperm.xlu0 %4169, %v3628_v52   ;;  %1487 = vperm.xlu1 %4170, %v1186_v41  }
 0x184   : > { %1507 = vperm.xlu0 %4169, %v3631_v40   ;;  %1495 = vperm.xlu1 %4170, %v1196_v53  }
 0x188   : > { %1515 = vperm.xlu0 %4169, %v3634_v34   ;;  %1503 = vperm.xlu1 %4170, %v1206_v44  }
 0x18c   : > { %1511 = vperm.xlu1 %4170, %v1216_v35  }
 0x1c2   : > { %v4131_v42 = vpop.permute.xlu0 %4130 }
 0x1c3   : > { %v4133_v47 = vunpack.i.h.bf16 %v4131_v42  ;;  %v4132_v50 = vunpack.i.l.bf16 %v4131_v42 }
 0x1c5   : > { %v3923_v58 = vpack.c.bf16 %v4133_v47, %v4132_v50 }
 0x1c6   : > { %v4136_v63 = vpop.permute.xlu0 %4135 }
 0x1c7   : > { %3925 = vmatprep.subr.msk.bf16.mxu0 %vm4909_vm4, %v3923_v58  ;;  %v4138_v5 = vunpack.i.h.bf16 %v4136_v63  ;;  %v4137_v23 = vunpack.i.l.bf16 %v4136_v63 }
 0x1c8   : > { %3928 = vmatpush3.bf16.xpose.msk.msra.mxu0 %vm4909_vm4, %v3923_v58 }
 0x1c9   : > { %v3929_v24 = vpack.c.bf16 %v4138_v5, %v4137_v23 }
 0x1ca   : > { %v4141_v19 = vpop.permute.xlu1 %4140 }
 0x1cb   : > { %3931 = vmatprep.subr.msk.bf16.mxu0 %vm4909_vm4, %v3929_v24  ;;  %v4143_v41 = vunpack.i.h.bf16 %v4141_v19  ;;  %v4142_v45 = vunpack.i.l.bf16 %v4141_v19 }
 0x1cd   : > { %v3935_v46 = vpack.c.bf16 %v4143_v41, %v4142_v45 }
 0x1ce   : > { %v4146_v51 = vpop.permute.xlu1 %4145 }
 0x1cf   : > { %v4148_v52 = vunpack.i.h.bf16 %v4146_v51  ;;  %v4147_v53 = vunpack.i.l.bf16 %v4146_v51 }
 0x1d0   : > { %3934 = vmatpush3.bf16.xpose.msk.msra.mxu0 %vm4909_vm4, %v3929_v24  ;;  %v4976_v24 = vand.u32 127, %v386_v1 }
 0x1d1   : > { %3937 = vmatprep.subr.msk.bf16.mxu0 %vm4909_vm4, %v3935_v46  ;;  %v3941_v55 = vpack.c.bf16 %v4148_v52, %v4147_v53 }
 0x1d2   : > { %v4151_v59 = vpop.permute.xlu0 %4150  ;;  %vm978_vm5 = vcmp.eq.s32.totalorder %v4428_v6, %v4976_v24  ;;  %vm977_vm8 = vcmp.eq.s32.totalorder %v4416_v2, %v4976_v24  ;;  %vm980_vm11 = vcmp.eq.s32.totalorder %v4434_v9, %v4976_v24  ;;  %vm979_vm15 = vcmp.eq.s32.totalorder %v4431_v8, %v4976_v24 }
 0x1d3   : > { %v4153_v60 = vunpack.i.h.bf16 %v4151_v59  ;;  %v4152_v40 = vunpack.i.l.bf16 %v4151_v59  ;;  %vm4984_vm7 = vmor %vm962_vm0, %vm978_vm5  ;;  %vm982_vm14 = vcmp.eq.s32.totalorder %v4473_v15, %v4976_v24  ;;  %vm965_vm0 = vcmp.gt.f32.partialorder %v4847_v22, 0.5 }
 0x1d4   : > { %vm4988_vm9 = vmor %vm961_vm6, %vm977_vm8  ;;  %vm981_vm5 = vcmp.eq.s32.totalorder %v4470_v14, %v4976_v24 }
 0x1d5   : > { %v3947_v4 = vpack.c.bf16 %v4153_v60, %v4152_v40  ;;  %vm5005_vm1 = vmor %vm964_vm10, %vm980_vm11  ;;  %vm967_vm10 = vcmp.gt.f32.partialorder %v4853_v38, 0.5  ;;  %vm983_vm11 = vcmp.eq.s32.totalorder %v4497_v17, %v4976_v24 }
 0x1d6   : > { %v4156_v44 = vpop.permute.xlu1 %4155  ;;  %vm5017_vm2 = vmor %vm963_vm13, %vm979_vm15 }
 0x1d7   : > { %v4158_v7 = vunpack.i.h.bf16 %v4156_v44  ;;  %v4157_v10 = vunpack.i.l.bf16 %v4156_v44  ;;  %vm5042_vm6 = vmor %vm966_vm3, %vm982_vm14  ;;  %vm969_vm3 = vcmp.gt.f32.partialorder %v4861_v48, 0.5  ;;  %vm985_vm14 = vcmp.eq.s32.totalorder %v4528_v20, %v4976_v24 }
 0x1d8   : > { %3940 = vmatpush3.bf16.xpose.msk.msra.mxu0 %vm4909_vm4, %v3935_v46  ;;  %vm5059_vm8 = vmor %vm965_vm0, %vm981_vm5 }
 0x1d9   : > { %3943 = vmatprep.subr.msk.bf16.mxu0 %vm4909_vm4, %v3941_v55  ;;  %v3953_v12 = vpack.c.bf16 %v4158_v7, %v4157_v10  ;;  %v4351_v7 = vmov -1e+30   ;;  %vm5093_vm15 = vmor %vm967_vm10, %vm983_vm11 }
 0x1da   : > { %v4161_v25 = vpop.permute.xlu0 %4160  ;;  %v5001_v10 = vsel %vm4984_vm7, 0.0, %v4351_v7  ;;  %vm968_vm7 = vcmp.gt.f32.partialorder %v4857_v43, 0.5  ;;  %vm5132_vm5 = vmor %vm969_vm3, %vm985_vm14 }
 0x1db   : > { %v4163_v34 = vunpack.i.h.bf16 %v4161_v25  ;;  %v4162_v35 = vunpack.i.l.bf16 %v4161_v25 }
 0x1dd   : > { %v3959_v39 = vpack.c.bf16 %v4163_v34, %v4162_v35 }
 0x1de   : > { %v4166_v28 = vpop.permute.xlu1 %4165 }
 0x1df   : > { %v4168_v42 = vunpack.i.h.bf16 %v4166_v28  ;;  %v4167_v47 = vunpack.i.l.bf16 %v4166_v28 }
 0x1e0   : > { %3946 = vmatpush3.bf16.xpose.msk.msra.mxu0 %vm4909_vm4, %v3941_v55 }
 0x1e1   : > { %3949 = vmatprep.subr.msk.bf16.mxu0 %vm4909_vm4, %v3947_v4  ;;  %v3965_v50 = vpack.c.bf16 %v4168_v42, %v4167_v47 }
 0x1e8   : > { %3952 = vmatpush3.bf16.xpose.msk.msra.mxu0 %vm4909_vm4, %v3947_v4 }
 0x1e9   : > { %3955 = vmatprep.subr.msk.bf16.mxu0 %vm4909_vm4, %v3953_v12 }
 0x1eb   : > { %v1456_v58 = vpop.permute.xlu0 %1455 }
 0x1ef   : > { %v1460_v63 = vpop.permute.xlu1 %1459  ;;  %v1468_v5 = vpop.permute.xlu0 %1467 }
 0x1f0   : > { %3958 = vmatpush3.bf16.xpose.msk.msra.mxu0 %vm4909_vm4, %v3953_v12  ;;  %v5015_v12 = vsel %vm4988_vm9, 0.0, %v4351_v7  ;;  %vm984_vm9 = vcmp.eq.s32.totalorder %v4500_v18, %v4976_v24  ;;  %v5077_v18 = vsel %vm5042_vm6, 0.0, %v4351_v7  ;;  %vm972_vm6 = vcmp.gt.f32.partialorder %v4883_v13, 0.5 }
 0x1f1   : > { %3961 = vmatprep.subr.msk.bf16.mxu0 %vm4909_vm4, %v3959_v39  ;;  %vm5081_vm13 = vmor %vm968_vm7, %vm984_vm9  ;;  %vm971_vm7 = vcmp.gt.f32.partialorder %v4881_v0, 0.5  ;;  %vm987_vm9 = vcmp.eq.s32.totalorder %v4580_v26, %v4976_v24 }
 0x1f2   : > { %v5111_v25 = vsel %vm5081_vm13, 0.0, %v4351_v7  ;;  %vm5174_vm11 = vmor %vm971_vm7, %vm987_vm9  ;;  %vm974_vm13 = vcmp.gt.f32.partialorder %v4889_v49, 0.5 }
 0x1f3   : > { %v1464_v23 = vpop.permute.xlu1 %1463  ;;  %v1476_v19 = vpop.permute.xlu0 %1475 }
 0x1f7   : > { %v1472_v41 = vpop.permute.xlu1 %1471  ;;  %v1484_v6 = vpop.permute.xlu0 %1483 }
 0x1f8   : > { %3964 = vmatpush3.bf16.xpose.msk.msra.mxu0 %vm4909_vm4, %v3959_v39 }
 0x1f9   : > { %3967 = vmatprep.subr.msk.bf16.mxu0 %vm4909_vm4, %v3965_v50 }
 0x1fb   : > { %v1480_v62 = vpop.permute.xlu1 %1479  ;;  %v1492_v47 = vpop.permute.xlu0 %1491 }
 0x1ff   : > { %v1500_v43 = vpop.permute.xlu0 %1499 }
 0x200   : > { %3970 = vmatpush3.bf16.xpose.msk.msra.mxu0 %vm4909_vm4, %v3965_v50 }
 0x207   : > { %3668 = vmatmul.mubr.msk.f32.vlgmr.msra.gmra.mrb[32].mxu0 %vm1273_vm12, %v4350_v37 }
 0x208   : > { %3670 = vmatprep.mubr.msk.f32.mxu0 %vm1273_vm12, %v4350_v37 }
 0x20b   : > { %3671 = vmatmul.mubr.msk.f32.gmra.mrb[34].mxu0 %vm1273_vm12, %v4350_v37 }
 0x20c   : > { %3673 = vmatprep.mubr.msk.f32.mxu0 %vm1273_vm12, %v4350_v37 }
 0x20f   : > { %3674 = vmatmul.mubr.msk.f32.gmra.mrb[36].mxu0 %vm1273_vm12, %v4350_v37 }
 0x210   : > { %3676 = vmatprep.mubr.msk.f32.mxu0 %vm1273_vm12, %v4350_v37 }
 0x213   : > { %3677 = vmatmul.mubr.msk.f32.gmra.mrb[38].mxu0 %vm1273_vm12, %v4350_v37 }
 0x214   : > { %3679 = vmatprep.mubr.msk.f32.mxu0 %vm1273_vm12, %v4350_v37 }
 0x217   : > { %3680 = vmatmul.mubr.msk.f32.gmra.mrb[40].mxu0 %vm1273_vm12, %v4350_v37 }
 0x218   : > { %3682 = vmatprep.mubr.msk.f32.mxu0 %vm1273_vm12, %v4350_v37 }
 0x21b   : > { %3683 = vmatmul.mubr.msk.f32.gmra.mrb[42].mxu0 %vm1273_vm12, %v4350_v37 }
 0x21c   : > { %3685 = vmatprep.mubr.msk.f32.mxu0 %vm1273_vm12, %v4350_v37 }
 0x21f   : > { %3686 = vmatmul.mubr.msk.f32.gmra.mrb[44].mxu0 %vm1273_vm12, %v4350_v37 }
 0x220   : > { %3688 = vmatprep.mubr.msk.f32.mxu0 %vm1273_vm12, %v4350_v37 }
 0x223   : > { %3689 = vmatmul.mubr.msk.f32.gmra.mrb[46].mxu0 %vm1273_vm12, %v4350_v37 }
 0x2da   : > { %v3669_v45 = vpop.f32.mrb[32].mxu0 }
 0x2db   : > { %v1519_v46 = vadd.f32 %v3669_v45, %v1460_v63  ;;  %v1375_v51 = vpop.f32.mrb[33].mxu0  ;;  %v5035_v63 = vsel %vm5005_vm1, 0.0, %v4351_v7  ;;  %v5052_v45 = vsel %vm5017_vm2, 0.0, %v4351_v7  ;;  %vm970_vm1 = vcmp.gt.f32.partialorder %v4869_v54, 0.5 }
 0x2dc   : > { %v1518_v52 = vadd.f32 %v1456_v58, %v1375_v51  ;;  %vm986_vm2 = vcmp.eq.s32.totalorder %v4531_v21, %v4976_v24 }
 0x2dd   : > { %v1535_v1 = vmul.f32 0.2, %v1519_v46  ;;  %vm5118_vm0 = vmor %vm970_vm1, %vm986_vm2  ;;  %vm973_vm1 = vcmp.gt.f32.partialorder %v4887_v36, 0.5  ;;  %vm989_vm2 = vcmp.eq.s32.totalorder %v4612_v29, %v4976_v24 }
 0x2de   : > { %v1534_v57 = vmul.f32 0.2, %v1518_v52  ;;  %v3672_v2 = vpop.f32.mrb[34].mxu0  ;;  %vm5208_vm14 = vmor %vm973_vm1, %vm989_vm2 }
 0x2df   : > { %v1551_v59 = vmax.f32 %v1519_v46, %v1535_v1  ;;  %v1521_v60 = vadd.f32 %v3672_v2, %v1468_v5  ;;  %v1385_v40 = vpop.f32.mrb[35].mxu0 }
 0x2e0   : > { %v1550_v4 = vmax.f32 %v1518_v52, %v1534_v57  ;;  %v1520_v44 = vadd.f32 %v1464_v23, %v1385_v40  ;;  %v1488_v23 = vpop.permute.xlu1 %1487 }
 0x2e1   : > { %v1537_v3 = vmul.f32 0.2, %v1521_v60  ;;  %v5010_v8 = vadd.f32 %v1551_v59, %v5001_v10 }
 0x2e2   : > { %v1536_v11 = vmul.f32 0.2, %v1520_v44  ;;  %v3675_v34 = vpop.f32.mrb[36].mxu0  ;;  %v5025_v35 = vadd.f32 %v1550_v4, %v5015_v12 }
 0x2e3   : > { %v1553_v39 = vmax.f32 %v1521_v60, %v1537_v3  ;;  %v1523_v28 = vadd.f32 %v3675_v34, %v1476_v19  ;;  %1584 = vmax.xlane.f32.xlu0 %v5010_v8  ;;  %v1395_v42 = vpop.f32.mrb[37].mxu0 }
 0x2e4   : > { %v1552_v50 = vmax.f32 %v1520_v44, %v1536_v11  ;;  %v1522_v58 = vadd.f32 %v1472_v41, %v1395_v42  ;;  %1582 = vmax.xlane.f32.xlu1 %v5025_v35  ;;  %v1496_v60 = vpop.permute.xlu1 %1495 }
 0x2e5   : > { %v1539_v19 = vmul.f32 0.2, %v1523_v28  ;;  %v5047_v41 = vadd.f32 %v1553_v39, %v5035_v63  ;;  %v5128_v39 = vsel %vm5093_vm15, 0.0, %v4351_v7  ;;  %vm990_vm15 = vcmp.eq.s32.totalorder %v4615_v30, %v4976_v24 }
 0x2e6   : > { %v1538_v31 = vmul.f32 0.2, %v1522_v58  ;;  %v3678_v46 = vpop.f32.mrb[38].mxu0  ;;  %v5067_v51 = vadd.f32 %v1552_v50, %v5052_v45  ;;  %vm5196_vm3 = vmor %vm974_vm13, %vm990_vm15 }
 0x2e7   : > { %v1555_v14 = vmax.f32 %v1523_v28, %v1539_v19  ;;  %v1525_v22 = vadd.f32 %v3678_v46, %v1484_v6  ;;  %v1405_v52 = vpop.f32.mrb[39].mxu0  ;;  %v5091_v6 = vsel %vm5059_vm8, 0.0, %v4351_v7  ;;  %vm988_vm8 = vcmp.eq.s32.totalorder %v4583_v27, %v4976_v24 }
 0x2e8   : > { %v1554_v53 = vmax.f32 %v1522_v58, %v1538_v31  ;;  %v1524_v1 = vadd.f32 %v1480_v62, %v1405_v52  ;;  %1588 = vmax.xlane.f32.xlu1 %v5047_v41  ;;  %1586 = vmax.xlane.f32.xlu0 %v5067_v51  ;;  %v1508_v58 = vpop.permute.xlu0 %1507  ;;  %v5150_v19 = vsel %vm5118_vm0, 0.0, %v4351_v7  ;;  %vm5157_vm10 = vmor %vm972_vm6, %vm988_vm8  ;;  %v1504_v31 = vpop.permute.xlu1 %1503  ;;  %vm976_vm0 = vcmp.gt.f32.partialorder %v4897_v16, 0.5 }
 0x2e9   : > { %v1541_v17 = vmul.f32 0.2, %v1525_v22  ;;  %v5086_v55 = vadd.f32 %v1555_v14, %v5077_v18  ;;  %v5192_v30 = vsel %vm5157_vm10, 0.0, %v4351_v7  ;;  %vm975_vm6 = vcmp.gt.f32.partialorder %v4894_v61, 0.5 }
 0x2ea   : > { %v1540_v2 = vmul.f32 0.2, %v1524_v1  ;;  %v3681_v62 = vpop.f32.mrb[40].mxu0  ;;  %v5101_v59 = vadd.f32 %v1554_v53, %v5091_v6  ;;  %vm991_vm8 = vcmp.eq.s32.totalorder %v4642_v32, %v4976_v24  ;;  %v5226_v28 = vsel %vm5196_vm3, 0.0, %v4351_v7 }
 0x2eb   : > { %v1557_v40 = vmax.f32 %v1525_v22, %v1541_v17  ;;  %v1527_v4 = vadd.f32 %v3681_v62, %v1492_v47  ;;  %v1415_v44 = vpop.f32.mrb[41].mxu0  ;;  %v5167_v22 = vsel %vm5132_vm5, 0.0, %v4351_v7  ;;  %vm992_vm5 = vcmp.eq.s32.totalorder %v4645_v33, %v4976_v24  ;;  %vm1007_vm9 = vmor %vm975_vm6, %vm991_vm8 }
 0x2ec   : > { %v1556_v9 = vmax.f32 %v1524_v1, %v1540_v2  ;;  %v1526_v3 = vadd.f32 %v1488_v23, %v1415_v44  ;;  %1592 = vmax.xlane.f32.xlu1 %v5086_v55  ;;  %1590 = vmax.xlane.f32.xlu0 %v5101_v59  ;;  %v1516_v49 = vpop.permute.xlu0 %1515  ;;  %vm1008_vm7 = vmor %vm976_vm0, %vm992_vm5  ;;  %vm1898_vm10 = vcmask 261120  }
 0x2ed   : > { %v1543_v11 = vmul.f32 0.2, %v1527_v4  ;;  %v5123_v34 = vadd.f32 %v1557_v40, %v5111_v25  ;;  %v5249_v16 = vsel %vm1008_vm7, 0.0, %v4351_v7 }
 0x2ee   : > { %v1542_v21 = vmul.f32 0.2, %v1526_v3  ;;  %v3684_v54 = vpop.f32.mrb[42].mxu0  ;;  %v5140_v42 = vadd.f32 %v1556_v9, %v5128_v39 }
 0x2ef   : > { %v1559_v48 = vmax.f32 %v1527_v4, %v1543_v11  ;;  %v1529_v47 = vadd.f32 %v3684_v54, %v1500_v43  ;;  %v1425_v50 = vpop.f32.mrb[43].mxu0  ;;  %v5206_v43 = vsel %vm5174_vm11, 0.0, %v4351_v7  ;;  %v1512_v4 = vpop.permute.xlu1 %1511  ;;  %v5239_v54 = vsel %vm5208_vm14, 0.0, %v4351_v7 }
 0x2f0   : > { %v1558_v5 = vmax.f32 %v1526_v3, %v1542_v21  ;;  %v1528_v23 = vadd.f32 %v1496_v60, %v1425_v50  ;;  %1596 = vmax.xlane.f32.xlu1 %v5123_v34  ;;  %1594 = vmax.xlane.f32.xlu0 %v5140_v42 }
 0x2f1   : > { %v1545_v46 = vmul.f32 0.2, %v1529_v47  ;;  %v5162_v14 = vadd.f32 %v1559_v48, %v5150_v19 }
 0x2f2   : > { %v1544_v13 = vmul.f32 0.2, %v1528_v23  ;;  %v3687_v52 = vpop.f32.mrb[44].mxu0  ;;  %v5182_v53 = vadd.f32 %v1558_v5, %v5167_v22 }
 0x2f3   : > { %v1561_v26 = vmax.f32 %v1529_v47, %v1545_v46  ;;  %v1531_v0 = vadd.f32 %v3687_v52, %v1508_v58  ;;  %v1435_v1 = vpop.f32.mrb[45].mxu0  ;;  %v5255_v58 = vsel %vm1007_vm9, 0.0, %v4351_v7 }
 0x2f4   : > { %v1560_v38 = vmax.f32 %v1528_v23, %v1544_v13  ;;  %v1530_v17 = vadd.f32 %v1504_v31, %v1435_v1  ;;  %1600 = vmax.xlane.f32.xlu1 %v5162_v14  ;;  %1598 = vmax.xlane.f32.xlu0 %v5182_v53 }
 0x2f5   : > { %v1547_v29 = vmul.f32 0.2, %v1531_v0  ;;  %v5201_v57 = vadd.f32 %v1561_v26, %v5192_v30 }
 0x2f6   : > { %v1546_v62 = vmul.f32 0.2, %v1530_v17  ;;  %v3690_v60 = vpop.f32.mrb[46].mxu0  ;;  %v5216_v40 = vadd.f32 %v1560_v38, %v5206_v43 }
 0x2f7   : > { %v1563_v44 = vmax.f32 %v1531_v0, %v1547_v29  ;;  %v1533_v9 = vadd.f32 %v3690_v60, %v1516_v49  ;;  %v1445_v3 = vpop.f32.mrb[47].mxu0 }
 0x2f8   : > { %v1562_v20 = vmax.f32 %v1530_v17, %v1546_v62  ;;  %v1532_v11 = vadd.f32 %v1512_v4, %v1445_v3  ;;  %1604 = vmax.xlane.f32.xlu1 %v5201_v57  ;;  %1602 = vmax.xlane.f32.xlu0 %v5216_v40 }
 0x2f9   : > { %v1549_v32 = vmul.f32 0.2, %v1533_v9  ;;  %v5234_v21 = vadd.f32 %v1563_v44, %v5226_v28 }
 0x2fa   : > { %v1548_v48 = vmul.f32 0.2, %v1532_v11  ;;  %v5244_v47 = vadd.f32 %v1562_v20, %v5239_v54 }
 0x2fb   : > { %v1565_v33 = vmax.f32 %v1533_v9, %v1549_v32 }
 0x2fc   : > { %v1564_v24 = vmax.f32 %v1532_v11, %v1548_v48  ;;  %1608 = vmax.xlane.f32.xlu1 %v5234_v21  ;;  %1606 = vmax.xlane.f32.xlu0 %v5244_v47 }
 0x2fd   : > { %v5252_v50 = vadd.f32 %v1565_v33, %v5249_v16 }
 0x2fe   : > { %v5258_v61 = vadd.f32 %v1564_v24, %v5255_v58 }
 0x300   : > { %1612 = vmax.xlane.f32.xlu1 %v5252_v50  ;;  %1610 = vmax.xlane.f32.xlu0 %v5258_v61 }
 0x370   : > { %v1585_v5 = vpop.xlane.xlu0 %1584 }
 0x371   : > { %v1615_v23 = vsub.f32 %v5010_v8, %v1585_v5  ;;  %v1583_v15 = vpop.xlane.xlu1 %1582 }
 0x372   : > { %v1614_v31 = vsub.f32 %v5025_v35, %v1583_v15 }
 0x373   : > { %v1632_v46 = vmul.f32 1.442695, %v1615_v23 }
 0x374   : > { %v1630_v27 = vmul.f32 1.442695, %v1614_v31 }
 0x375   : > { %4211 = vpow2.f32 %v1632_v46  ;;  %v1589_v13 = vpop.xlane.xlu1 %1588  ;;  %v1587_v52 = vpop.xlane.xlu0 %1586 }
 0x376   : > { %4213 = vpow2.f32 %v1630_v27  ;;  %v1617_v7 = vsub.f32 %v5047_v41, %v1589_v13  ;;  %v1616_v26 = vsub.f32 %v5067_v51, %v1587_v52 }
 0x378   : > { %v1636_v0 = vmul.f32 1.442695, %v1617_v7  ;;  %v1634_v1 = vmul.f32 1.442695, %v1616_v26 }
 0x379   : > { %v1593_v38 = vpop.xlane.xlu1 %1592  ;;  %v1591_v17 = vpop.xlane.xlu0 %1590 }
 0x37a   : > { %4215 = vpow2.f32 %v1636_v0  ;;  %v1619_v8 = vsub.f32 %v5086_v55, %v1593_v38  ;;  %v1618_v36 = vsub.f32 %v5101_v59, %v1591_v17 }
 0x37b   : > { %4217 = vpow2.f32 %v1634_v1 }
 0x37c   : > { %v1640_v35 = vmul.f32 1.442695, %v1619_v8  ;;  %v1638_v29 = vmul.f32 1.442695, %v1618_v36 }
 0x37d   : > { %v1597_v2 = vpop.xlane.xlu1 %1596  ;;  %v1595_v49 = vpop.xlane.xlu0 %1594 }
 0x37e   : > { %4219 = vpow2.f32 %v1640_v35  ;;  %v1621_v62 = vsub.f32 %v5123_v34, %v1597_v2  ;;  %v1620_v41 = vsub.f32 %v5140_v42, %v1595_v49  ;;  %v1893_v2 = vld [vmem:[%s5715_s5] sm:$0xff]  ;;  %v1894_v49 = vld [vmem:[%s5715_s5 + $0x8] sm:$0xff] }
 0x37f   : > { %v5270_v51 = vpop.eup %4211  ;;  %4221 = vpow2.f32 %v1638_v29 }
 0x380   : > { %v5272_v60 = vpop.eup %4213  ;;  %v1644_v4 = vmul.f32 1.442695, %v1621_v62  ;;  %v1642_v44 = vmul.f32 1.442695, %v1620_v41  ;;  %1664 = vadd.xlane.f32.xlu1 %v5270_v51  ;;  %v1895_v62 = vld [vmem:[%s5715_s5 + $0x10] sm:$0xff]  ;;  %v4003_v41 = vpack.c.bf16 %v1894_v49, %v1893_v2 }
 0x381   : > { %v1601_v55 = vpop.xlane.xlu1 %1600  ;;  %v1599_v59 = vpop.xlane.xlu0 %1598  ;;  %1662 = vadd.xlane.f32.xlu0 %v5272_v60 }
 0x382   : > { %4223 = vpow2.f32 %v1644_v4  ;;  %v1623_v9 = vsub.f32 %v5162_v14, %v1601_v55  ;;  %v1622_v34 = vsub.f32 %v5182_v53, %v1599_v59  ;;  %v1896_v4 = vld [vmem:[%s5715_s5 + $0x18] sm:$0xff]  ;;  %4004 = vmatprep.subr.bf16.mxu0 %v4003_v41 }
 0x383   : > { %4225 = vpow2.f32 %v1642_v44  ;;  %v4007_v44 = vpack.c.bf16 %v1896_v4, %v1895_v62  ;;  %4006 = vmatpush3.bf16.msra.mxu0 %v4003_v41 }
 0x384   : > { %v5278_v42 = vpop.eup %4215  ;;  %v1648_v3 = vmul.f32 1.442695, %v1623_v9  ;;  %v1646_v20 = vmul.f32 1.442695, %v1622_v34 }
 0x385   : > { %v5280_v11 = vpop.eup %4217  ;;  %v1605_v32 = vpop.xlane.xlu1 %1604  ;;  %1668 = vadd.xlane.f32.xlu1 %v5278_v42  ;;  %4008 = vmatprep.subr.bf16.mxu0 %v4007_v44 }
 0x386   : > { %v1603_v48 = vpop.xlane.xlu0 %1602  ;;  %4227 = vpow2.f32 %v1648_v3  ;;  %v1625_v33 = vsub.f32 %v5201_v57, %v1605_v32  ;;  %1666 = vadd.xlane.f32.xlu0 %v5280_v11 }
 0x387   : > { %v1624_v24 = vsub.f32 %v5216_v40, %v1603_v48  ;;  %4229 = vpow2.f32 %v1646_v20  ;;  %4010 = vmatpush3.bf16.msra.mxu0 %v4007_v44 }
 0x388   : > { %v5286_v14 = vpop.eup %4219  ;;  %v1652_v53 = vmul.f32 1.442695, %v1625_v33 }
 0x389   : > { %v1650_v5 = vmul.f32 1.442695, %v1624_v24  ;;  %v5288_v23 = vpop.eup %4221  ;;  %v1609_v15 = vpop.xlane.xlu1 %1608  ;;  %1672 = vadd.xlane.f32.xlu1 %v5286_v14 }
 0x38a   : > { %v1607_v31 = vpop.xlane.xlu0 %1606  ;;  %4231 = vpow2.f32 %v1652_v53  ;;  %v1627_v46 = vsub.f32 %v5234_v21, %v1609_v15  ;;  %1670 = vadd.xlane.f32.xlu0 %v5288_v23 }
 0x38b   : > { %v1626_v57 = vsub.f32 %v5244_v47, %v1607_v31  ;;  %4233 = vpow2.f32 %v1650_v5 }
 0x38c   : > { %v5294_v40 = vpop.eup %4223  ;;  %v1656_v27 = vmul.f32 1.442695, %v1627_v46 }
 0x38d   : > { %v1654_v13 = vmul.f32 1.442695, %v1626_v57  ;;  %v5296_v52 = vpop.eup %4225  ;;  %1676 = vadd.xlane.f32.xlu1 %v5294_v40  ;;  %v1613_v7 = vpop.xlane.xlu1 %1612 }
 0x38e   : > { %v1611_v26 = vpop.xlane.xlu0 %1610  ;;  %4235 = vpow2.f32 %v1656_v27  ;;  %v1629_v0 = vsub.f32 %v5252_v50, %v1613_v7  ;;  %1674 = vadd.xlane.f32.xlu0 %v5296_v52 }
 0x38f   : > { %v1628_v21 = vsub.f32 %v5258_v61, %v1611_v26  ;;  %4237 = vpow2.f32 %v1654_v13 }
 0x390   : > { %v5302_v47 = vpop.eup %4227  ;;  %v1660_v1 = vmul.f32 1.442695, %v1629_v0 }
 0x391   : > { %v1658_v38 = vmul.f32 1.442695, %v1628_v21  ;;  %v5304_v17 = vpop.eup %4229  ;;  %1680 = vadd.xlane.f32.xlu1 %v5302_v47 }
 0x392   : > { %4239 = vpow2.f32 %v1660_v1  ;;  %1678 = vadd.xlane.f32.xlu0 %v5304_v17 }
 0x393   : > { %4241 = vpow2.f32 %v1658_v38 }
 0x394   : > { %v5308_v8 = vpop.eup %4231 }
 0x395   : > { %v5310_v50 = vpop.eup %4233  ;;  %1684 = vadd.xlane.f32.xlu1 %v5308_v8 }
 0x396   : > { %1682 = vadd.xlane.f32.xlu0 %v5310_v50 }
 0x398   : > { %v5314_v61 = vpop.eup %4235 }
 0x399   : > { %v5316_v36 = vpop.eup %4237  ;;  %1688 = vadd.xlane.f32.xlu1 %v5314_v61 }
 0x39a   : > { %1686 = vadd.xlane.f32.xlu0 %v5316_v36 }
 0x39c   : > { %v5320_v35 = vpop.eup %4239 }
 0x39d   : > { %v5322_v29 = vpop.eup %4241  ;;  %1692 = vadd.xlane.f32.xlu1 %v5320_v35 }
 0x39e   : > { %1690 = vadd.xlane.f32.xlu0 %v5322_v29 }
 0x40d   : > { %v1665_v55 = vpop.xlane.xlu1 %1664 }
 0x40e   : > { %4243 = vrcp.f32 %v1665_v55  ;;  %v1663_v59 = vpop.xlane.xlu0 %1662 }
 0x40f   : > { %4245 = vrcp.f32 %v1663_v59 }
 0x412   : > { %v1669_v9 = vpop.xlane.xlu1 %1668 }
 0x413   : > { %4247 = vrcp.f32 %v1669_v9  ;;  %v1667_v34 = vpop.xlane.xlu0 %1666 }
 0x414   : > { %4249 = vrcp.f32 %v1667_v34 }
 0x416   : > { %v1673_v3 = vpop.xlane.xlu1 %1672 }
 0x417   : > { %4251 = vrcp.f32 %v1673_v3  ;;  %v1671_v20 = vpop.xlane.xlu0 %1670 }
 0x418   : > { %v4244_v32 = vpop.eup %4243  ;;  %4253 = vrcp.f32 %v1671_v20 }
 0x419   : > { %v4246_v48 = vpop.eup %4245  ;;  %v1697_v53 = vmul.f32 %v4244_v32, %v5270_v51 }
 0x41a   : > { %v1677_v33 = vpop.xlane.xlu1 %1676  ;;  %v1695_v24 = vmul.f32 %v4246_v48, %v5272_v60 }
 0x41b   : > { %4255 = vrcp.f32 %v1677_v33  ;;  %v1675_v5 = vpop.xlane.xlu0 %1674 }
 0x41c   : > { %4257 = vrcp.f32 %v1675_v5  ;;  %3723 = vmatprep.mubr.f32.mxu1 %v1695_v24 }
 0x41d   : > { %v4248_v15 = vpop.eup %4247  ;;  %3724 = vmatmul.mubr.f32.vlgmr.msra.gmra.mrb[32].mxu1 %v1697_v53 }
 0x41e   : > { %v4250_v31 = vpop.eup %4249  ;;  %v1681_v46 = vpop.xlane.xlu1 %1680  ;;  %v1701_v57 = vmul.f32 %v4248_v15, %v5278_v42 }
 0x41f   : > { %4259 = vrcp.f32 %v1681_v46  ;;  %v1679_v27 = vpop.xlane.xlu0 %1678  ;;  %v1699_v13 = vmul.f32 %v4250_v31, %v5280_v11 }
 0x420   : > { %4261 = vrcp.f32 %v1679_v27 }
 0x421   : > { %v4252_v7 = vpop.eup %4251  ;;  %3726 = vmatprep.mubr.f32.mxu1 %v1699_v13 }
 0x422   : > { %v4254_v60 = vpop.eup %4253  ;;  %3727 = vmatmul.mubr.f32.gmra.mrb[34].mxu1 %v1701_v57  ;;  %v1685_v51 = vpop.xlane.xlu1 %1684  ;;  %v1705_v26 = vmul.f32 %v4252_v7, %v5286_v14 }
 0x423   : > { %4263 = vrcp.f32 %v1685_v51  ;;  %v1683_v0 = vpop.xlane.xlu0 %1682  ;;  %v1703_v21 = vmul.f32 %v4254_v60, %v5288_v23 }
 0x424   : > { %4265 = vrcp.f32 %v1683_v0 }
 0x425   : > { %v4256_v1 = vpop.eup %4255  ;;  %3729 = vmatprep.mubr.f32.mxu1 %v1703_v21 }
 0x426   : > { %v4258_v42 = vpop.eup %4257  ;;  %3730 = vmatmul.mubr.f32.gmra.mrb[36].mxu1 %v1705_v26  ;;  %v1689_v38 = vpop.xlane.xlu1 %1688  ;;  %v1709_v11 = vmul.f32 %v4256_v1, %v5294_v40 }
 0x427   : > { %4267 = vrcp.f32 %v1689_v38  ;;  %v1687_v2 = vpop.xlane.xlu0 %1686  ;;  %v1707_v49 = vmul.f32 %v4258_v42, %v5296_v52 }
 0x428   : > { %4269 = vrcp.f32 %v1687_v2 }
 0x429   : > { %v4260_v62 = vpop.eup %4259  ;;  %3732 = vmatprep.mubr.f32.mxu1 %v1707_v49 }
 0x42a   : > { %v4262_v14 = vpop.eup %4261  ;;  %3733 = vmatmul.mubr.f32.gmra.mrb[38].mxu1 %v1709_v11  ;;  %v1693_v41 = vpop.xlane.xlu1 %1692  ;;  %v1713_v23 = vmul.f32 %v4260_v62, %v5302_v47 }
 0x42b   : > { %4271 = vrcp.f32 %v1693_v41  ;;  %v1691_v4 = vpop.xlane.xlu0 %1690  ;;  %v1711_v44 = vmul.f32 %v4262_v14, %v5304_v17 }
 0x42c   : > { %4273 = vrcp.f32 %v1691_v4 }
 0x42d   : > { %v4264_v55 = vpop.eup %4263  ;;  %3735 = vmatprep.mubr.f32.mxu1 %v1711_v44 }
 0x42e   : > { %v4266_v40 = vpop.eup %4265  ;;  %3736 = vmatmul.mubr.f32.gmra.mrb[40].mxu1 %v1713_v23  ;;  %v1717_v59 = vmul.f32 %v4264_v55, %v5308_v8  ;;  %v3305_v8 = vld [vmem:[%s5714_s4] ss:$0 sm:$0xff] }
 0x42f   : > { %v1715_v52 = vmul.f32 %v4266_v40, %v5310_v50 }
 0x431   : > { %v4268_v9 = vpop.eup %4267  ;;  %3738 = vmatprep.mubr.f32.mxu1 %v1715_v52 }
 0x432   : > { %v4270_v34 = vpop.eup %4269  ;;  %3739 = vmatmul.mubr.f32.gmra.mrb[42].mxu1 %v1717_v59  ;;  %v1721_v3 = vmul.f32 %v4268_v9, %v5314_v61 }
 0x433   : > { %v1719_v47 = vmul.f32 %v4270_v34, %v5316_v36 }
 0x435   : > { %v4272_v20 = vpop.eup %4271  ;;  %3741 = vmatprep.mubr.f32.mxu1 %v1719_v47 }
 0x436   : > { %v4274_v17 = vpop.eup %4273  ;;  %3742 = vmatmul.mubr.f32.gmra.mrb[44].mxu1 %v1721_v3  ;;  %v1725_v32 = vmul.f32 %v4272_v20, %v5320_v35 }
 0x437   : > { %v1723_v48 = vmul.f32 %v4274_v17, %v5322_v29 }
 0x439   : > { %3744 = vmatprep.mubr.f32.mxu1 %v1723_v48 }
 0x43a   : > { %3745 = vmatmul.mubr.f32.gmra.mrb[46].mxu1 %v1725_v32 }
 0x43b   : > { %3811 = vmatprep.mubr.msk.f32.mxu1 %vm1273_vm12, %v4350_v37 }
 0x4f0   : > { %v3725_v50 = vpop.f32.mrb[32].mxu1 }
 0x4f1   : > { %v1804_v61 = vadd.f32 %v3725_v50, %v3305_v8  ;;  %v1798_v36 = vpop.f32.mrb[33].mxu1 }
 0x4f2   : > { %v1799_v33 = vadd.f32 %v3305_v8, %v1798_v36 }
 0x4f3   : > { %v1878_v53 = vmax.f32 %v1804_v61, 0.0 }
 0x4f4   : > { %v1877_v24 = vmax.f32 %v1799_v33, 0.0 }
 0x4f5   : > { %v3728_v5 = vpop.f32.mrb[34].mxu1 }
 0x4f6   : > { %v1814_v35 = vadd.f32 %v3728_v5, %v3305_v8  ;;  %v1808_v15 = vpop.f32.mrb[35].mxu1  ;;  %3755 = vmatprep.mubr.msk.f32.mxu0 %vm1898_vm10, %v1877_v24 }
 0x4f7   : > { %v1809_v29 = vadd.f32 %v3305_v8, %v1808_v15  ;;  %3756 = vmatmul.mubr.msk.f32.vlgmr.msra.gmra.mrb[48].mxu0 %vm1898_vm10, %v1878_v53 }
 0x4f8   : > { %v1880_v57 = vmax.f32 %v1814_v35, 0.0 }
 0x4f9   : > { %v1879_v31 = vmax.f32 %v1809_v29, 0.0  ;;  %v3731_v46 = vpop.f32.mrb[36].mxu1 }
 0x4fa   : > { %v1824_v27 = vadd.f32 %v3731_v46, %v3305_v8  ;;  %v1818_v13 = vpop.f32.mrb[37].mxu1 }
 0x4fb   : > { %v1819_v7 = vadd.f32 %v3305_v8, %v1818_v13  ;;  %3758 = vmatprep.mubr.msk.f32.mxu0 %vm1898_vm10, %v1879_v31 }
 0x4fc   : > { %3759 = vmatmul.mubr.msk.f32.gmra.mrb[50].mxu0 %vm1898_vm10, %v1880_v57  ;;  %v1882_v26 = vmax.f32 %v1824_v27, 0.0 }
 0x4fd   : > { %v1881_v60 = vmax.f32 %v1819_v7, 0.0  ;;  %v3734_v51 = vpop.f32.mrb[38].mxu1 }
 0x4fe   : > { %v1834_v0 = vadd.f32 %v3734_v51, %v3305_v8  ;;  %v1828_v21 = vpop.f32.mrb[39].mxu1 }
 0x4ff   : > { %v1829_v1 = vadd.f32 %v3305_v8, %v1828_v21  ;;  %3761 = vmatprep.mubr.msk.f32.mxu0 %vm1898_vm10, %v1881_v60 }
 0x500   : > { %3762 = vmatmul.mubr.msk.f32.gmra.mrb[52].mxu0 %vm1898_vm10, %v1882_v26  ;;  %v1884_v11 = vmax.f32 %v1834_v0, 0.0 }
 0x501   : > { %v1883_v42 = vmax.f32 %v1829_v1, 0.0  ;;  %v3737_v38 = vpop.f32.mrb[40].mxu1 }
 0x502   : > { %v1844_v2 = vadd.f32 %v3737_v38, %v3305_v8  ;;  %v1838_v49 = vpop.f32.mrb[41].mxu1 }
 0x503   : > { %v1839_v62 = vadd.f32 %v3305_v8, %v1838_v49  ;;  %3764 = vmatprep.mubr.msk.f32.mxu0 %vm1898_vm10, %v1883_v42 }
 0x504   : > { %3765 = vmatmul.mubr.msk.f32.gmra.mrb[54].mxu0 %vm1898_vm10, %v1884_v11  ;;  %v1886_v23 = vmax.f32 %v1844_v2, 0.0 }
 0x505   : > { %v1885_v14 = vmax.f32 %v1839_v62, 0.0  ;;  %v3740_v41 = vpop.f32.mrb[42].mxu1 }
 0x506   : > { %v1854_v4 = vadd.f32 %v3740_v41, %v3305_v8  ;;  %v1848_v44 = vpop.f32.mrb[43].mxu1 }
 0x507   : > { %v1849_v55 = vadd.f32 %v3305_v8, %v1848_v44  ;;  %3767 = vmatprep.mubr.msk.f32.mxu0 %vm1898_vm10, %v1885_v14 }
 0x508   : > { %3768 = vmatmul.mubr.msk.f32.gmra.mrb[56].mxu0 %vm1898_vm10, %v1886_v23  ;;  %v1888_v52 = vmax.f32 %v1854_v4, 0.0 }
 0x509   : > { %v1887_v40 = vmax.f32 %v1849_v55, 0.0  ;;  %v3743_v59 = vpop.f32.mrb[44].mxu1 }
 0x50a   : > { %v1864_v9 = vadd.f32 %v3743_v59, %v3305_v8  ;;  %v1858_v34 = vpop.f32.mrb[45].mxu1 }
 0x50b   : > { %v1859_v3 = vadd.f32 %v3305_v8, %v1858_v34  ;;  %3770 = vmatprep.mubr.msk.f32.mxu0 %vm1898_vm10, %v1887_v40 }
 0x50c   : > { %3771 = vmatmul.mubr.msk.f32.gmra.mrb[58].mxu0 %vm1898_vm10, %v1888_v52  ;;  %v1890_v17 = vmax.f32 %v1864_v9, 0.0 }
 0x50d   : > { %v1889_v47 = vmax.f32 %v1859_v3, 0.0  ;;  %v3746_v20 = vpop.f32.mrb[46].mxu1 }
 0x50e   : > { %v1874_v32 = vadd.f32 %v3746_v20, %v3305_v8  ;;  %v1868_v48 = vpop.f32.mrb[47].mxu1 }
 0x50f   : > { %v1869_v50 = vadd.f32 %v3305_v8, %v1868_v48  ;;  %3773 = vmatprep.mubr.msk.f32.mxu0 %vm1898_vm10, %v1889_v47 }
 0x510   : > { %3774 = vmatmul.mubr.msk.f32.gmra.mrb[60].mxu0 %vm1898_vm10, %v1890_v17  ;;  %v1892_v36 = vmax.f32 %v1874_v32, 0.0 }
 0x511   : > { %v1891_v61 = vmax.f32 %v1869_v50, 0.0 }
 0x513   : > { %3776 = vmatprep.mubr.msk.f32.mxu0 %vm1898_vm10, %v1891_v61 }
 0x514   : > { %3777 = vmatmul.mubr.msk.f32.gmra.mrb[62].mxu0 %vm1898_vm10, %v1892_v36 }
 0x5ca   : > { %v3757_v33 = vpop.f32.mrb[48].mxu0 }
 0x5cb   : > { %v2013_v24 = vpop.f32.mrb[49].mxu0 }
 0x5cc   : > { %v4171_v53 = vpack.i.bf16 %v3757_v33, %v2013_v24  ;;  %v5375_v5 = vpack.c.bf16 %v3757_v33, %v2013_v24 }
 0x5ce   : > { %4172 = vrot.lane.b32.xlu0 %v4171_v53, %s4349_s25  ;;  %4060 = vmatprep.subr.bf16.mxu0 %v5375_v5 }
 0x5cf   : > { %v3760_v8 = vpop.f32.mrb[50].mxu0  ;;  %4062 = vmatpush3.bf16.msra.mxu0 %v5375_v5 }
 0x5d0   : > { %v2023_v35 = vpop.f32.mrb[51].mxu0 }
 0x5d1   : > { %v4176_v15 = vpack.i.bf16 %v3760_v8, %v2023_v35  ;;  %v5380_v29 = vpack.c.bf16 %v3760_v8, %v2023_v35 }
 0x5d3   : > { %4177 = vrot.lane.b32.xlu1 %v4176_v15, %s4349_s25  ;;  %v3763_v31 = vpop.f32.mrb[52].mxu0  ;;  %4064 = vmatprep.subr.bf16.mxu0 %v5380_v29 }
 0x5d4   : > { %v2033_v46 = vpop.f32.mrb[53].mxu0  ;;  %4066 = vmatpush3.bf16.msra.mxu0 %v5380_v29 }
 0x5d5   : > { %v4181_v57 = vpack.i.bf16 %v3763_v31, %v2033_v46  ;;  %v5385_v27 = vpack.c.bf16 %v3763_v31, %v2033_v46 }
 0x5d7   : > { %4182 = vrot.lane.b32.xlu1 %v4181_v57, %s4349_s25  ;;  %v3766_v13 = vpop.f32.mrb[54].mxu0  ;;  %4068 = vmatprep.subr.bf16.mxu0 %v5385_v27 }
 0x5d8   : > { %v2043_v7 = vpop.f32.mrb[55].mxu0  ;;  %4070 = vmatpush3.bf16.msra.mxu0 %v5385_v27 }
 0x5d9   : > { %v4186_v60 = vpack.i.bf16 %v3766_v13, %v2043_v7  ;;  %v5390_v51 = vpack.c.bf16 %v3766_v13, %v2043_v7 }
 0x5db   : > { %4187 = vrot.lane.b32.xlu0 %v4186_v60, %s4349_s25  ;;  %v3769_v26 = vpop.f32.mrb[56].mxu0  ;;  %4072 = vmatprep.subr.bf16.mxu0 %v5390_v51 }
 0x5dc   : > { %v2053_v0 = vpop.f32.mrb[57].mxu0  ;;  %4074 = vmatpush3.bf16.msra.mxu0 %v5390_v51 }
 0x5dd   : > { %v4191_v21 = vpack.i.bf16 %v3769_v26, %v2053_v0  ;;  %v5395_v1 = vpack.c.bf16 %v3769_v26, %v2053_v0 }
 0x5df   : > { %4192 = vrot.lane.b32.xlu1 %v4191_v21, %s4349_s25  ;;  %v3772_v42 = vpop.f32.mrb[58].mxu0  ;;  %4076 = vmatprep.subr.bf16.mxu0 %v5395_v1 }
 0x5e0   : > { %v2063_v38 = vpop.f32.mrb[59].mxu0  ;;  %4078 = vmatpush3.bf16.msra.mxu0 %v5395_v1 }
 0x5e1   : > { %v4196_v11 = vpack.i.bf16 %v3772_v42, %v2063_v38  ;;  %v5400_v2 = vpack.c.bf16 %v3772_v42, %v2063_v38 }
 0x5e3   : > { %4197 = vrot.lane.b32.xlu0 %v4196_v11, %s4349_s25  ;;  %v3775_v49 = vpop.f32.mrb[60].mxu0  ;;  %4080 = vmatprep.subr.bf16.mxu0 %v5400_v2 }
 0x5e4   : > { %v2073_v62 = vpop.f32.mrb[61].mxu0  ;;  %4082 = vmatpush3.bf16.msra.mxu0 %v5400_v2 }
 0x5e5   : > { %v4201_v14 = vpack.i.bf16 %v3775_v49, %v2073_v62  ;;  %v5405_v41 = vpack.c.bf16 %v3775_v49, %v2073_v62 }
 0x5e7   : > { %4202 = vrot.lane.b32.xlu1 %v4201_v14, %s4349_s25  ;;  %v3778_v23 = vpop.f32.mrb[62].mxu0  ;;  %4084 = vmatprep.subr.bf16.mxu0 %v5405_v41 }
 0x5e8   : > { %v2083_v4 = vpop.f32.mrb[63].mxu0  ;;  %4086 = vmatpush3.bf16.msra.mxu0 %v5405_v41 }
 0x5e9   : > { %v4206_v44 = vpack.i.bf16 %v3778_v23, %v2083_v4  ;;  %v5410_v55 = vpack.c.bf16 %v3778_v23, %v2083_v4 }
 0x5eb   : > { %2318 = vperm.xlu1 %4170, %v2013_v24   ;;  %4207 = vrot.lane.b32.xlu0 %v4206_v44, %s4349_s25 }
 0x5ec   : > { %4088 = vmatprep.subr.bf16.mxu0 %v5410_v55 }
 0x5ed   : > { %4090 = vmatpush3.bf16.msra.mxu0 %v5410_v55 }
 0x5ef   : > { %2326 = vperm.xlu1 %4170, %v2023_v35   ;;  %2322 = vperm.xlu0 %4169, %v3757_v33  }
 0x5f3   : > { %2334 = vperm.xlu1 %4170, %v2033_v46   ;;  %2330 = vperm.xlu0 %4169, %v3760_v8  }
 0x5f7   : > { %2342 = vperm.xlu1 %4170, %v2043_v7   ;;  %2338 = vperm.xlu0 %4169, %v3763_v31  }
 0x5fb   : > { %2350 = vperm.xlu1 %4170, %v2053_v0   ;;  %2346 = vperm.xlu0 %4169, %v3766_v13  }
 0x5ff   : > { %2358 = vperm.xlu1 %4170, %v2063_v38   ;;  %2354 = vperm.xlu0 %4169, %v3769_v26  }
 0x603   : > { %2366 = vperm.xlu1 %4170, %v2073_v62   ;;  %2362 = vperm.xlu0 %4169, %v3772_v42  }
 0x607   : > { %2374 = vperm.xlu1 %4170, %v2083_v4   ;;  %2370 = vperm.xlu0 %4169, %v3775_v49  }
 0x60b   : > { %2378 = vperm.xlu0 %4169, %v3778_v23  }
 0x640   : > { %v4173_v40 = vpop.permute.xlu0 %4172 }
 0x641   : > { %v4175_v59 = vunpack.i.h.bf16 %v4173_v40  ;;  %v4174_v52 = vunpack.i.l.bf16 %v4173_v40 }
 0x643   : > { %v4011_v9 = vpack.c.bf16 %v4175_v59, %v4174_v52 }
 0x645   : > { %v4178_v34 = vpop.permute.xlu1 %4177  ;;  %4013 = vmatprep.subr.msk.bf16.mxu1 %vm4909_vm4, %v4011_v9 }
 0x646   : > { %v4180_v3 = vunpack.i.h.bf16 %v4178_v34  ;;  %v4179_v47 = vunpack.i.l.bf16 %v4178_v34  ;;  %4016 = vmatpush3.bf16.xpose.msk.msra.mxu1 %vm4909_vm4, %v4011_v9 }
 0x648   : > { %v4017_v20 = vpack.c.bf16 %v4180_v3, %v4179_v47 }
 0x649   : > { %v4183_v17 = vpop.permute.xlu1 %4182 }
 0x64a   : > { %v4185_v32 = vunpack.i.h.bf16 %v4183_v17  ;;  %v4184_v48 = vunpack.i.l.bf16 %v4183_v17  ;;  %4019 = vmatprep.subr.msk.bf16.mxu1 %vm4909_vm4, %v4017_v20 }
 0x64c   : > { %v4023_v50 = vpack.c.bf16 %v4185_v32, %v4184_v48 }
 0x64d   : > { %v4188_v61 = vpop.permute.xlu0 %4187 }
 0x64e   : > { %4022 = vmatpush3.bf16.xpose.msk.msra.mxu1 %vm4909_vm4, %v4017_v20  ;;  %v4190_v36 = vunpack.i.h.bf16 %v4188_v61  ;;  %v4189_v33 = vunpack.i.l.bf16 %v4188_v61 }
 0x64f   : > { %4025 = vmatprep.subr.msk.bf16.mxu1 %vm4909_vm4, %v4023_v50 }
 0x650   : > { %v4029_v24 = vpack.c.bf16 %v4190_v36, %v4189_v33 }
 0x651   : > { %v4193_v53 = vpop.permute.xlu1 %4192 }
 0x652   : > { %v4195_v8 = vunpack.i.h.bf16 %v4193_v53  ;;  %v4194_v35 = vunpack.i.l.bf16 %v4193_v53 }
 0x654   : > { %v4035_v15 = vpack.c.bf16 %v4195_v8, %v4194_v35 }
 0x655   : > { %v4198_v31 = vpop.permute.xlu0 %4197 }
 0x656   : > { %4028 = vmatpush3.bf16.xpose.msk.msra.mxu1 %vm4909_vm4, %v4023_v50  ;;  %v4200_v46 = vunpack.i.h.bf16 %v4198_v31  ;;  %v4199_v57 = vunpack.i.l.bf16 %v4198_v31 }
 0x657   : > { %4031 = vmatprep.subr.msk.bf16.mxu1 %vm4909_vm4, %v4029_v24 }
 0x658   : > { %v4041_v13 = vpack.c.bf16 %v4200_v46, %v4199_v57 }
 0x659   : > { %v4203_v7 = vpop.permute.xlu1 %4202 }
 0x65a   : > { %v4205_v60 = vunpack.i.h.bf16 %v4203_v7  ;;  %v4204_v26 = vunpack.i.l.bf16 %v4203_v7 }
 0x65c   : > { %v4047_v0 = vpack.c.bf16 %v4205_v60, %v4204_v26 }
 0x65d   : > { %v4208_v21 = vpop.permute.xlu0 %4207 }
 0x65e   : > { %4034 = vmatpush3.bf16.xpose.msk.msra.mxu1 %vm4909_vm4, %v4029_v24  ;;  %v4210_v42 = vunpack.i.h.bf16 %v4208_v21  ;;  %v4209_v38 = vunpack.i.l.bf16 %v4208_v21 }
 0x65f   : > { %4037 = vmatprep.subr.msk.bf16.mxu1 %vm4909_vm4, %v4035_v15 }
 0x660   : > { %v4053_v11 = vpack.c.bf16 %v4210_v42, %v4209_v38 }
 0x666   : > { %4040 = vmatpush3.bf16.xpose.msk.msra.mxu1 %vm4909_vm4, %v4035_v15 }
 0x667   : > { %4043 = vmatprep.subr.msk.bf16.mxu1 %vm4909_vm4, %v4041_v13 }
 0x66e   : > { %4046 = vmatpush3.bf16.xpose.msk.msra.mxu1 %vm4909_vm4, %v4041_v13  ;;  %v2323_v56 = vpop.permute.xlu0 %2322 }
 0x66f   : > { %4049 = vmatprep.subr.msk.bf16.mxu1 %vm4909_vm4, %v4047_v0 }
 0x676   : > { %4052 = vmatpush3.bf16.xpose.msk.msra.mxu1 %vm4909_vm4, %v4047_v0 }
 0x677   : > { %4055 = vmatprep.subr.msk.bf16.mxu1 %vm4909_vm4, %v4053_v11 }
 0x67e   : > { %4058 = vmatpush3.bf16.xpose.msk.msra.mxu1 %vm4909_vm4, %v4053_v11 }
 0x67f   : > { %4099 = vmatprep.subr.bf16.mxu1 %v5375_v5 }
 0x685   : > { %3812 = vmatmul.mubr.msk.f32.vlgmr.msra.gmra.mrb[48].mxu1 %vm1273_vm12, %v4350_v37 }
 0x686   : > { %4107 = vmatpush3.bf16.msra.mxu1 %v5375_v5  ;;  %3814 = vmatprep.mubr.msk.f32.mxu1 %vm1273_vm12, %v4350_v37  ;;  %v2319_v5 = vpop.permute.xlu1 %2318 }
 0x687   : > { %4100 = vmatprep.subr.bf16.mxu1 %v5380_v29 }
 0x689   : > { %3815 = vmatmul.mubr.msk.f32.gmra.mrb[50].mxu1 %vm1273_vm12, %v4350_v37 }
 0x68a   : > { %4108 = vmatpush3.bf16.msra.mxu1 %v5380_v29  ;;  %3817 = vmatprep.mubr.msk.f32.mxu1 %vm1273_vm12, %v4350_v37  ;;  %v2331_v29 = vpop.permute.xlu0 %2330 }
 0x68b   : > { %4101 = vmatprep.subr.bf16.mxu1 %v5385_v27 }
 0x68d   : > { %3818 = vmatmul.mubr.msk.f32.gmra.mrb[52].mxu1 %vm1273_vm12, %v4350_v37 }
 0x68e   : > { %4109 = vmatpush3.bf16.msra.mxu1 %v5385_v27  ;;  %3820 = vmatprep.mubr.msk.f32.mxu1 %vm1273_vm12, %v4350_v37  ;;  %v2327_v27 = vpop.permute.xlu1 %2326 }
 0x68f   : > { %4102 = vmatprep.subr.bf16.mxu1 %v5390_v51 }
 0x691   : > { %3821 = vmatmul.mubr.msk.f32.gmra.mrb[54].mxu1 %vm1273_vm12, %v4350_v37 }
 0x692   : > { %4110 = vmatpush3.bf16.msra.mxu1 %v5390_v51  ;;  %3823 = vmatprep.mubr.msk.f32.mxu1 %vm1273_vm12, %v4350_v37  ;;  %v2339_v51 = vpop.permute.xlu0 %2338 }
 0x693   : > { %4103 = vmatprep.subr.bf16.mxu1 %v5395_v1 }
 0x695   : > { %3824 = vmatmul.mubr.msk.f32.gmra.mrb[56].mxu1 %vm1273_vm12, %v4350_v37 }
 0x696   : > { %4111 = vmatpush3.bf16.msra.mxu1 %v5395_v1  ;;  %3826 = vmatprep.mubr.msk.f32.mxu1 %vm1273_vm12, %v4350_v37  ;;  %v2335_v1 = vpop.permute.xlu1 %2334  ;;  %v2347_v23 = vpop.permute.xlu0 %2346 }
 0x697   : > { %4104 = vmatprep.subr.bf16.mxu1 %v5400_v2 }
 0x699   : > { %3827 = vmatmul.mubr.msk.f32.gmra.mrb[58].mxu1 %vm1273_vm12, %v4350_v37 }
 0x69a   : > { %4112 = vmatpush3.bf16.msra.mxu1 %v5400_v2  ;;  %3829 = vmatprep.mubr.msk.f32.mxu1 %vm1273_vm12, %v4350_v37  ;;  %v2343_v40 = vpop.permute.xlu1 %2342  ;;  %v2355_v61 = vpop.permute.xlu0 %2354 }
 0x69b   : > { %4105 = vmatprep.subr.bf16.mxu1 %v5405_v41 }
 0x69d   : > { %3830 = vmatmul.mubr.msk.f32.gmra.mrb[60].mxu1 %vm1273_vm12, %v4350_v37 }
 0x69e   : > { %4113 = vmatpush3.bf16.msra.mxu1 %v5405_v41  ;;  %3832 = vmatprep.mubr.msk.f32.mxu1 %vm1273_vm12, %v4350_v37  ;;  %v2351_v24 = vpop.permute.xlu1 %2350 }
 0x69f   : > { %4106 = vmatprep.subr.bf16.mxu1 %v5410_v55 }
 0x6a1   : > { %3833 = vmatmul.mubr.msk.f32.gmra.mrb[62].mxu1 %vm1273_vm12, %v4350_v37 }
 0x6a2   : > { %4114 = vmatpush3.bf16.msra.mxu1 %v5410_v55 }
 0x758   : > { %v3813_v2 = vpop.f32.mrb[48].mxu1 }
 0x759   : > { %v2382_v49 = vadd.f32 %v3813_v2, %v2323_v56  ;;  %v2238_v62 = vpop.f32.mrb[49].mxu1 }
 0x75a   : > { %v2381_v14 = vadd.f32 %v2319_v5, %v2238_v62 }
 0x75b   : > { %v2398_v41 = vmul.f32 0.2, %v2382_v49 }
 0x75c   : > { %v2397_v4 = vmul.f32 0.2, %v2381_v14  ;;  %v3816_v44 = vpop.f32.mrb[50].mxu1 }
 0x75d   : > { %v2414_v59 = vmax.f32 %v2382_v49, %v2398_v41  ;;  %v2384_v52 = vadd.f32 %v3816_v44, %v2331_v29  ;;  %v2248_v37 = vpop.f32.mrb[51].mxu1 }
 0x75e   : > { %v2413_v9 = vmax.f32 %v2381_v14, %v2397_v4  ;;  %v2383_v55 = vadd.f32 %v2327_v27, %v2248_v37 }
 0x75f   : > { %v2400_v34 = vmul.f32 0.2, %v2384_v52  ;;  %v5494_v3 = vadd.f32 %v2414_v59, %v5001_v10 }
 0x760   : > { %v2399_v47 = vmul.f32 0.2, %v2383_v55  ;;  %v3819_v20 = vpop.f32.mrb[52].mxu1  ;;  %v5497_v17 = vadd.f32 %v2413_v9, %v5015_v12 }
 0x761   : > { %v2416_v32 = vmax.f32 %v2384_v52, %v2400_v34  ;;  %v2386_v48 = vadd.f32 %v3819_v20, %v2339_v51  ;;  %2447 = vmax.xlane.f32.xlu0 %v5494_v3  ;;  %v2258_v50 = vpop.f32.mrb[53].mxu1 }
 0x762   : > { %v2415_v36 = vmax.f32 %v2383_v55, %v2399_v47  ;;  %v2385_v33 = vadd.f32 %v2335_v1, %v2258_v50  ;;  %2445 = vmax.xlane.f32.xlu1 %v5497_v17 }
 0x763   : > { %v2402_v53 = vmul.f32 0.2, %v2386_v48  ;;  %v5502_v10 = vadd.f32 %v2416_v32, %v5035_v63  ;;  %v2363_v63 = vpop.permute.xlu0 %2362 }
 0x764   : > { %v2401_v8 = vmul.f32 0.2, %v2385_v33  ;;  %v3822_v35 = vpop.f32.mrb[54].mxu1  ;;  %v5505_v12 = vadd.f32 %v2415_v36, %v5052_v45  ;;  %v2359_v45 = vpop.permute.xlu1 %2358 }
 0x765   : > { %v2418_v15 = vmax.f32 %v2386_v48, %v2402_v53  ;;  %v2388_v31 = vadd.f32 %v3822_v35, %v2347_v23  ;;  %v2268_v46 = vpop.f32.mrb[55].mxu1 }
 0x766   : > { %v2417_v57 = vmax.f32 %v2385_v33, %v2401_v8  ;;  %v2387_v13 = vadd.f32 %v2343_v40, %v2268_v46  ;;  %2451 = vmax.xlane.f32.xlu1 %v5502_v10  ;;  %2449 = vmax.xlane.f32.xlu0 %v5505_v12 }
 0x767   : > { %v2404_v7 = vmul.f32 0.2, %v2388_v31  ;;  %v5510_v60 = vadd.f32 %v2418_v15, %v5077_v18  ;;  %v2371_v62 = vpop.permute.xlu0 %2370 }
 0x768   : > { %v2403_v26 = vmul.f32 0.2, %v2387_v13  ;;  %v3825_v0 = vpop.f32.mrb[56].mxu1  ;;  %v5513_v21 = vadd.f32 %v2417_v57, %v5091_v6  ;;  %v2367_v23 = vpop.permute.xlu1 %2366 }
 0x769   : > { %v2420_v42 = vmax.f32 %v2388_v31, %v2404_v7  ;;  %v2390_v38 = vadd.f32 %v3825_v0, %v2355_v61  ;;  %v2278_v11 = vpop.f32.mrb[57].mxu1 }
 0x76a   : > { %v2419_v56 = vmax.f32 %v2387_v13, %v2403_v26  ;;  %v2389_v5 = vadd.f32 %v2351_v24, %v2278_v11  ;;  %2455 = vmax.xlane.f32.xlu1 %v5510_v60  ;;  %2453 = vmax.xlane.f32.xlu0 %v5513_v21 }
 0x76b   : > { %v2406_v29 = vmul.f32 0.2, %v2390_v38  ;;  %v5518_v18 = vadd.f32 %v2420_v42, %v5111_v25 }
 0x76c   : > { %v2405_v27 = vmul.f32 0.2, %v2389_v5  ;;  %v3828_v51 = vpop.f32.mrb[58].mxu1  ;;  %v5521_v1 = vadd.f32 %v2419_v56, %v5128_v39 }
 0x76d   : > { %v2422_v6 = vmax.f32 %v2390_v38, %v2406_v29  ;;  %v2392_v2 = vadd.f32 %v3828_v51, %v2363_v63  ;;  %v2288_v49 = vpop.f32.mrb[59].mxu1 }
 0x76e   : > { %v2421_v14 = vmax.f32 %v2389_v5, %v2405_v27  ;;  %v2391_v41 = vadd.f32 %v2359_v45, %v2288_v49  ;;  %2459 = vmax.xlane.f32.xlu1 %v5518_v18  ;;  %2457 = vmax.xlane.f32.xlu0 %v5521_v1 }
 0x76f   : > { %v2408_v4 = vmul.f32 0.2, %v2392_v2  ;;  %v5526_v25 = vadd.f32 %v2422_v6, %v5150_v19  ;;  %v2379_v19 = vpop.permute.xlu0 %2378 }
 0x770   : > { %v2407_v44 = vmul.f32 0.2, %v2391_v41  ;;  %v3831_v40 = vpop.f32.mrb[60].mxu1  ;;  %v5529_v39 = vadd.f32 %v2421_v14, %v5167_v22  ;;  %v2375_v22 = vpop.permute.xlu1 %2374 }
 0x771   : > { %v2424_v59 = vmax.f32 %v2392_v2, %v2408_v4  ;;  %v2394_v52 = vadd.f32 %v3831_v40, %v2371_v62  ;;  %v2298_v37 = vpop.f32.mrb[61].mxu1 }
 0x772   : > { %v2423_v9 = vmax.f32 %v2391_v41, %v2407_v44  ;;  %v2393_v55 = vadd.f32 %v2367_v23, %v2298_v37  ;;  %2463 = vmax.xlane.f32.xlu1 %v5526_v25  ;;  %2461 = vmax.xlane.f32.xlu0 %v5529_v39 }
 0x773   : > { %v2410_v34 = vmul.f32 0.2, %v2394_v52  ;;  %v5534_v47 = vadd.f32 %v2424_v59, %v5192_v30 }
 0x774   : > { %v2409_v20 = vmul.f32 0.2, %v2393_v55  ;;  %v3834_v32 = vpop.f32.mrb[62].mxu1  ;;  %v5537_v48 = vadd.f32 %v2423_v9, %v5206_v43 }
 0x775   : > { %v2426_v50 = vmax.f32 %v2394_v52, %v2410_v34  ;;  %v2396_v61 = vadd.f32 %v3834_v32, %v2379_v19  ;;  %v2308_v36 = vpop.f32.mrb[63].mxu1 }
 0x776   : > { %v2425_v33 = vmax.f32 %v2393_v55, %v2409_v20  ;;  %v2395_v24 = vadd.f32 %v2375_v22, %v2308_v36  ;;  %2467 = vmax.xlane.f32.xlu1 %v5534_v47  ;;  %2465 = vmax.xlane.f32.xlu0 %v5537_v48 }
 0x777   : > { %v2412_v53 = vmul.f32 0.2, %v2396_v61  ;;  %v5542_v30 = vadd.f32 %v2426_v50, %v5226_v28 }
 0x778   : > { %v2411_v8 = vmul.f32 0.2, %v2395_v24  ;;  %v5545_v35 = vadd.f32 %v2425_v33, %v5239_v54 }
 0x779   : > { %v2428_v43 = vmax.f32 %v2396_v61, %v2412_v53 }
 0x77a   : > { %v2427_v15 = vmax.f32 %v2395_v24, %v2411_v8  ;;  %2471 = vmax.xlane.f32.xlu1 %v5542_v30  ;;  %2469 = vmax.xlane.f32.xlu0 %v5545_v35 }
 0x77b   : > { %v5550_v31 = vadd.f32 %v2428_v43, %v5249_v16 }
 0x77c   : > { %v5553_v46 = vadd.f32 %v2427_v15, %v5255_v58 }
 0x77e   : > { %2475 = vmax.xlane.f32.xlu1 %v5550_v31  ;;  %2473 = vmax.xlane.f32.xlu0 %v5553_v46 }
 0x7ee   : > { %v2448_v28 = vpop.xlane.xlu0 %2447 }
 0x7ef   : > { %v2478_v54 = vsub.f32 %v5494_v3, %v2448_v28  ;;  %v2446_v57 = vpop.xlane.xlu1 %2445  ;;  %v2740_v28 = vld [vmem:[%s5717_s7] sm:$0xff] }
 0x7f0   : > { %v2477_v13 = vsub.f32 %v5497_v17, %v2446_v57 }
 0x7f1   : > { %v2495_v7 = vmul.f32 1.442695, %v2478_v54  ;;  %v2741_v54 = vld [vmem:[%s5717_s7 + $0x8] sm:$0xff] }
 0x7f2   : > { %v2493_v63 = vmul.f32 1.442695, %v2477_v13  ;;  %v4091_v57 = vpack.c.bf16 %v2741_v54, %v2740_v28 }
 0x7f3   : > { %4275 = vpow2.f32 %v2495_v7  ;;  %v2452_v26 = vpop.xlane.xlu1 %2451  ;;  %v2450_v0 = vpop.xlane.xlu0 %2449 }
 0x7f4   : > { %4277 = vpow2.f32 %v2493_v63  ;;  %v2480_v16 = vsub.f32 %v5502_v10, %v2452_v26  ;;  %v2479_v58 = vsub.f32 %v5505_v12, %v2450_v0  ;;  %4092 = vmatprep.subr.bf16.mxu0 %v4091_v57 }
 0x7f6   : > { %v2499_v45 = vmul.f32 1.442695, %v2480_v16  ;;  %v2497_v42 = vmul.f32 1.442695, %v2479_v58 }
 0x7f7   : > { %v2456_v38 = vpop.xlane.xlu1 %2455  ;;  %v2454_v11 = vpop.xlane.xlu0 %2453 }
 0x7f8   : > { %4279 = vpow2.f32 %v2499_v45  ;;  %v2482_v3 = vsub.f32 %v5510_v60, %v2456_v38  ;;  %v2481_v56 = vsub.f32 %v5513_v21, %v2454_v11  ;;  %v2742_v45 = vld [vmem:[%s5717_s7 + $0x10] sm:$0xff] }
 0x7f9   : > { %4281 = vpow2.f32 %v2497_v42  ;;  %v2743_v42 = vld [vmem:[%s5717_s7 + $0x18] sm:$0xff] }
 0x7fa   : > { %v2503_v17 = vmul.f32 1.442695, %v2482_v3  ;;  %v2501_v5 = vmul.f32 1.442695, %v2481_v56 }
 0x7fb   : > { %v2460_v29 = vpop.xlane.xlu1 %2459  ;;  %v2458_v27 = vpop.xlane.xlu0 %2457 }
 0x7fc   : > { %4283 = vpow2.f32 %v2503_v17  ;;  %v2484_v51 = vsub.f32 %v5518_v18, %v2460_v29  ;;  %v2483_v10 = vsub.f32 %v5521_v1, %v2458_v27 }
 0x7fd   : > { %v5565_v12 = vpop.eup %4275  ;;  %4285 = vpow2.f32 %v2501_v5  ;;  %v4095_v5 = vpack.c.bf16 %v2743_v42, %v2742_v45 }
 0x7fe   : > { %v5567_v6 = vpop.eup %4277  ;;  %v2507_v2 = vmul.f32 1.442695, %v2484_v51  ;;  %v2505_v49 = vmul.f32 1.442695, %v2483_v10  ;;  %2527 = vadd.xlane.f32.xlu1 %v5565_v12 }
 0x7ff   : > { %v2464_v60 = vpop.xlane.xlu1 %2463  ;;  %v2462_v21 = vpop.xlane.xlu0 %2461  ;;  %2525 = vadd.xlane.f32.xlu0 %v5567_v6 }
 0x800   : > { %4287 = vpow2.f32 %v2507_v2  ;;  %v2486_v62 = vsub.f32 %v5526_v25, %v2464_v60  ;;  %v2485_v18 = vsub.f32 %v5529_v39, %v2462_v21 }
 0x801   : > { %4289 = vpow2.f32 %v2505_v49 }
 0x802   : > { %v5573_v1 = vpop.eup %4279  ;;  %v2511_v14 = vmul.f32 1.442695, %v2486_v62  ;;  %v2509_v41 = vmul.f32 1.442695, %v2485_v18 }
 0x803   : > { %v5575_v23 = vpop.eup %4281  ;;  %v2468_v4 = vpop.xlane.xlu1 %2467  ;;  %2531 = vadd.xlane.f32.xlu1 %v5573_v1 }
 0x804   : > { %v2466_v44 = vpop.xlane.xlu0 %2465  ;;  %4291 = vpow2.f32 %v2511_v14  ;;  %v2488_v40 = vsub.f32 %v5534_v47, %v2468_v4  ;;  %2529 = vadd.xlane.f32.xlu0 %v5575_v23 }
 0x805   : > { %v2487_v59 = vsub.f32 %v5537_v48, %v2466_v44  ;;  %4293 = vpow2.f32 %v2509_v41 }
 0x806   : > { %v5581_v25 = vpop.eup %4283  ;;  %v2515_v39 = vmul.f32 1.442695, %v2488_v40 }
 0x807   : > { %v2513_v52 = vmul.f32 1.442695, %v2487_v59  ;;  %v5583_v37 = vpop.eup %4285  ;;  %v2472_v9 = vpop.xlane.xlu1 %2471  ;;  %2535 = vadd.xlane.f32.xlu1 %v5581_v25 }
 0x808   : > { %v2470_v55 = vpop.xlane.xlu0 %2469  ;;  %4295 = vpow2.f32 %v2515_v39  ;;  %v2490_v34 = vsub.f32 %v5542_v30, %v2472_v9  ;;  %2533 = vadd.xlane.f32.xlu0 %v5583_v37 }
 0x809   : > { %v2489_v47 = vsub.f32 %v5545_v35, %v2470_v55  ;;  %4297 = vpow2.f32 %v2513_v52 }
 0x80a   : > { %v5589_v19 = vpop.eup %4287  ;;  %v2519_v20 = vmul.f32 1.442695, %v2490_v34 }
 0x80b   : > { %v2517_v32 = vmul.f32 1.442695, %v2489_v47  ;;  %v5591_v48 = vpop.eup %4289  ;;  %2539 = vadd.xlane.f32.xlu1 %v5589_v19  ;;  %v2476_v22 = vpop.xlane.xlu1 %2475 }
 0x80c   : > { %v2474_v50 = vpop.xlane.xlu0 %2473  ;;  %4299 = vpow2.f32 %v2519_v20  ;;  %v2492_v61 = vsub.f32 %v5550_v31, %v2476_v22  ;;  %2537 = vadd.xlane.f32.xlu0 %v5591_v48 }
 0x80d   : > { %v2491_v36 = vsub.f32 %v5553_v46, %v2474_v50  ;;  %4301 = vpow2.f32 %v2517_v32 }
 0x80e   : > { %v5597_v33 = vpop.eup %4291  ;;  %v2523_v24 = vmul.f32 1.442695, %v2492_v61 }
 0x80f   : > { %v2521_v53 = vmul.f32 1.442695, %v2491_v36  ;;  %v5599_v30 = vpop.eup %4293  ;;  %2543 = vadd.xlane.f32.xlu1 %v5597_v33 }
 0x810   : > { %4303 = vpow2.f32 %v2523_v24  ;;  %2541 = vadd.xlane.f32.xlu0 %v5599_v30 }
 0x811   : > { %4305 = vpow2.f32 %v2521_v53 }
 0x812   : > { %v5603_v8 = vpop.eup %4295 }
 0x813   : > { %v5605_v35 = vpop.eup %4297  ;;  %2547 = vadd.xlane.f32.xlu1 %v5603_v8 }
 0x814   : > { %2545 = vadd.xlane.f32.xlu0 %v5605_v35 }
 0x816   : > { %v5609_v43 = vpop.eup %4299 }
 0x817   : > { %v5611_v15 = vpop.eup %4301  ;;  %2551 = vadd.xlane.f32.xlu1 %v5609_v43 }
 0x818   : > { %2549 = vadd.xlane.f32.xlu0 %v5611_v15 }
 0x81a   : > { %v5615_v31 = vpop.eup %4303 }
 0x81b   : > { %v5617_v46 = vpop.eup %4305  ;;  %2555 = vadd.xlane.f32.xlu1 %v5615_v31 }
 0x81c   : > { %2553 = vadd.xlane.f32.xlu0 %v5617_v46 }
 0x88b   : > { %v2528_v13 = vpop.xlane.xlu1 %2527 }
 0x88c   : > { %4307 = vrcp.f32 %v2528_v13  ;;  %v2526_v7 = vpop.xlane.xlu0 %2525 }
 0x88d   : > { %4309 = vrcp.f32 %v2526_v7 }
 0x890   : > { %v2532_v63 = vpop.xlane.xlu1 %2531 }
 0x891   : > { %4311 = vrcp.f32 %v2532_v63  ;;  %v2530_v26 = vpop.xlane.xlu0 %2529 }
 0x892   : > { %4313 = vrcp.f32 %v2530_v26 }
 0x894   : > { %v2536_v0 = vpop.xlane.xlu1 %2535 }
 0x895   : > { %4315 = vrcp.f32 %v2536_v0  ;;  %v2534_v16 = vpop.xlane.xlu0 %2533 }
 0x896   : > { %v4308_v58 = vpop.eup %4307  ;;  %4317 = vrcp.f32 %v2534_v16 }
 0x897   : > { %v4310_v38 = vpop.eup %4309  ;;  %v2560_v56 = vmul.f32 %v4308_v58, %v5565_v12 }
 0x898   : > { %v2540_v11 = vpop.xlane.xlu1 %2539  ;;  %v2558_v3 = vmul.f32 %v4310_v38, %v5567_v6 }
 0x899   : > { %4319 = vrcp.f32 %v2540_v11  ;;  %v2538_v17 = vpop.xlane.xlu0 %2537 }
 0x89a   : > { %4321 = vrcp.f32 %v2538_v17  ;;  %3867 = vmatprep.mubr.f32.mxu0 %v2558_v3 }
 0x89b   : > { %v4312_v29 = vpop.eup %4311  ;;  %3868 = vmatmul.mubr.f32.vlgmr.msra.gmra.mrb[64].mxu0 %v2560_v56 }
 0x89c   : > { %v4314_v27 = vpop.eup %4313  ;;  %v2544_v51 = vpop.xlane.xlu1 %2543  ;;  %v2564_v10 = vmul.f32 %v4312_v29, %v5573_v1  ;;  %4094 = vmatpush3.bf16.msra.mxu0 %v4091_v57 }
 0x89d   : > { %4323 = vrcp.f32 %v2544_v51  ;;  %v2542_v2 = vpop.xlane.xlu0 %2541  ;;  %v2562_v49 = vmul.f32 %v4314_v27, %v5575_v23  ;;  %4096 = vmatprep.subr.bf16.mxu0 %v4095_v5 }
 0x89e   : > { %4325 = vrcp.f32 %v2542_v2 }
 0x89f   : > { %v4316_v6 = vpop.eup %4315  ;;  %3870 = vmatprep.mubr.f32.mxu0 %v2562_v49  ;;  %v3355_v49 = vld [vmem:[#allocation2] ss:$0 sm:$0xff] }
 0x8a0   : > { %v4318_v12 = vpop.eup %4317  ;;  %3871 = vmatmul.mubr.f32.gmra.mrb[66].mxu0 %v2564_v10  ;;  %v2548_v60 = vpop.xlane.xlu1 %2547  ;;  %v2568_v21 = vmul.f32 %v4316_v6, %v5581_v25 }
 0x8a1   : > { %4327 = vrcp.f32 %v2548_v60  ;;  %v2546_v62 = vpop.xlane.xlu0 %2545  ;;  %v2566_v18 = vmul.f32 %v4318_v12, %v5583_v37  ;;  %4098 = vmatpush3.bf16.msra.mxu0 %v4095_v5 }
 0x8a2   : > { %4329 = vrcp.f32 %v2546_v62 }
 0x8a3   : > { %v4320_v1 = vpop.eup %4319  ;;  %3873 = vmatprep.mubr.f32.mxu0 %v2566_v18 }
 0x8a4   : > { %v4322_v14 = vpop.eup %4321  ;;  %3874 = vmatmul.mubr.f32.gmra.mrb[68].mxu0 %v2568_v21  ;;  %v2552_v41 = vpop.xlane.xlu1 %2551  ;;  %v2572_v23 = vmul.f32 %v4320_v1, %v5589_v19 }
 0x8a5   : > { %4331 = vrcp.f32 %v2552_v41  ;;  %v2550_v4 = vpop.xlane.xlu0 %2549  ;;  %v2570_v44 = vmul.f32 %v4322_v14, %v5591_v48 }
 0x8a6   : > { %4333 = vrcp.f32 %v2550_v4 }
 0x8a7   : > { %v4324_v40 = vpop.eup %4323  ;;  %3876 = vmatprep.mubr.f32.mxu0 %v2570_v44 }
 0x8a8   : > { %v4326_v59 = vpop.eup %4325  ;;  %v2576_v25 = vmul.f32 %v4324_v40, %v5597_v33  ;;  %3877 = vmatmul.mubr.f32.gmra.mrb[70].mxu0 %v2572_v23  ;;  %v2556_v39 = vpop.xlane.xlu1 %2555  ;;  %v3354_v33 = vld [vmem:[%s5716_s6] ss:$0 sm:$0xff] }
 0x8a9   : > { %4335 = vrcp.f32 %v2556_v39  ;;  %v2554_v52 = vpop.xlane.xlu0 %2553  ;;  %v2574_v37 = vmul.f32 %v4326_v59, %v5599_v30 }
 0x8aa   : > { %4337 = vrcp.f32 %v2554_v52 }
 0x8ab   : > { %v4328_v9 = vpop.eup %4327  ;;  %3879 = vmatprep.mubr.f32.mxu1 %v2574_v37 }
 0x8ac   : > { %v4330_v55 = vpop.eup %4329  ;;  %3880 = vmatmul.mubr.f32.vlgmr.msra.gmra.mrb[64].mxu1 %v2576_v25  ;;  %v2580_v34 = vmul.f32 %v4328_v9, %v5603_v8 }
 0x8ad   : > { %v2578_v47 = vmul.f32 %v4330_v55, %v5605_v35 }
 0x8af   : > { %v4332_v19 = vpop.eup %4331  ;;  %3882 = vmatprep.mubr.f32.mxu1 %v2578_v47 }
 0x8b0   : > { %v4334_v20 = vpop.eup %4333  ;;  %3883 = vmatmul.mubr.f32.gmra.mrb[66].mxu1 %v2580_v34  ;;  %v2584_v32 = vmul.f32 %v4332_v19, %v5609_v43 }
 0x8b1   : > { %v2582_v48 = vmul.f32 %v4334_v20, %v5611_v15 }
 0x8b3   : > { %v4336_v22 = vpop.eup %4335  ;;  %3885 = vmatprep.mubr.f32.mxu1 %v2582_v48 }
 0x8b4   : > { %v4338_v50 = vpop.eup %4337  ;;  %3886 = vmatmul.mubr.f32.gmra.mrb[68].mxu1 %v2584_v32  ;;  %v2588_v61 = vmul.f32 %v4336_v22, %v5615_v31 }
 0x8b5   : > { %v2586_v36 = vmul.f32 %v4338_v50, %v5617_v46 }
 0x8b7   : > { %3888 = vmatprep.mubr.f32.mxu1 %v2586_v36 }
 0x8b8   : > { %3889 = vmatmul.mubr.f32.gmra.mrb[70].mxu1 %v2588_v61 }
 0x96e   : > { %v3869_v24 = vpop.f32.mrb[64].mxu0 }
 0x96f   : > { %v2661_v53 = vpop.f32.mrb[65].mxu0  ;;  %v2667_v8 = vadd.f32 %v3869_v24, %v3354_v33 }
 0x970   : > { %v2662_v30 = vadd.f32 %v3354_v33, %v2661_v53 }
 0x972   : > { %3899 = vmatprep.mubr.msk.f32.mxu0 %vm1898_vm10, %v2662_v30 }
 0x973   : > { %v3872_v35 = vpop.f32.mrb[66].mxu0  ;;  %3900 = vmatmul.mubr.msk.f32.vlgmr.msra.gmra.mrb[72].mxu0 %vm1898_vm10, %v2667_v8 }
 0x974   : > { %v2671_v43 = vpop.f32.mrb[67].mxu0  ;;  %v2677_v31 = vadd.f32 %v3872_v35, %v3354_v33 }
 0x975   : > { %v2672_v15 = vadd.f32 %v3354_v33, %v2671_v43 }
 0x977   : > { %v3875_v28 = vpop.f32.mrb[68].mxu0  ;;  %3902 = vmatprep.mubr.msk.f32.mxu0 %vm1898_vm10, %v2672_v15 }
 0x978   : > { %v2681_v46 = vpop.f32.mrb[69].mxu0  ;;  %3903 = vmatmul.mubr.msk.f32.gmra.mrb[74].mxu0 %vm1898_vm10, %v2677_v31  ;;  %v2687_v57 = vadd.f32 %v3875_v28, %v3354_v33 }
 0x979   : > { %v2682_v54 = vadd.f32 %v3354_v33, %v2681_v46 }
 0x97b   : > { %v3878_v13 = vpop.f32.mrb[70].mxu0  ;;  %3905 = vmatprep.mubr.msk.f32.mxu0 %vm1898_vm10, %v2682_v54 }
 0x97c   : > { %v2691_v7 = vpop.f32.mrb[71].mxu0  ;;  %3906 = vmatmul.mubr.msk.f32.gmra.mrb[76].mxu0 %vm1898_vm10, %v2687_v57  ;;  %v2697_v26 = vadd.f32 %v3878_v13, %v3354_v33 }
 0x97d   : > { %v2692_v63 = vadd.f32 %v3354_v33, %v2691_v7 }
 0x97f   : > { %v3881_v0 = vpop.f32.mrb[64].mxu1  ;;  %3908 = vmatprep.mubr.msk.f32.mxu0 %vm1898_vm10, %v2692_v63 }
 0x980   : > { %v2701_v16 = vpop.f32.mrb[65].mxu1  ;;  %3909 = vmatmul.mubr.msk.f32.gmra.mrb[78].mxu0 %vm1898_vm10, %v2697_v26  ;;  %v2707_v45 = vadd.f32 %v3881_v0, %v3354_v33 }
 0x981   : > { %v2702_v58 = vadd.f32 %v3354_v33, %v2701_v16 }
 0x983   : > { %v3884_v42 = vpop.f32.mrb[66].mxu1  ;;  %3911 = vmatprep.mubr.msk.f32.mxu0 %vm1898_vm10, %v2702_v58 }
 0x984   : > { %v2711_v38 = vpop.f32.mrb[67].mxu1  ;;  %3912 = vmatmul.mubr.msk.f32.gmra.mrb[80].mxu0 %vm1898_vm10, %v2707_v45  ;;  %v2717_v3 = vadd.f32 %v3884_v42, %v3354_v33 }
 0x985   : > { %v2712_v11 = vadd.f32 %v3354_v33, %v2711_v38 }
 0x987   : > { %v3887_v56 = vpop.f32.mrb[68].mxu1  ;;  %3914 = vmatprep.mubr.msk.f32.mxu0 %vm1898_vm10, %v2712_v11 }
 0x988   : > { %v2721_v17 = vpop.f32.mrb[69].mxu1  ;;  %3915 = vmatmul.mubr.msk.f32.gmra.mrb[82].mxu0 %vm1898_vm10, %v2717_v3  ;;  %v2727_v29 = vadd.f32 %v3887_v56, %v3354_v33 }
 0x989   : > { %v2722_v5 = vadd.f32 %v3354_v33, %v2721_v17 }
 0x98b   : > { %v3890_v27 = vpop.f32.mrb[70].mxu1  ;;  %3917 = vmatprep.mubr.msk.f32.mxu0 %vm1898_vm10, %v2722_v5 }
 0x98c   : > { %v2731_v51 = vpop.f32.mrb[71].mxu1  ;;  %3918 = vmatmul.mubr.msk.f32.gmra.mrb[84].mxu0 %vm1898_vm10, %v2727_v29  ;;  %v2737_v2 = vadd.f32 %v3890_v27, %v3354_v33 }
 0x98d   : > { %v2732_v10 = vadd.f32 %v3354_v33, %v2731_v51 }
 0x98f   : > { %3920 = vmatprep.mubr.msk.f32.mxu0 %vm1898_vm10, %v2732_v10 }
 0x990   : > { %3921 = vmatmul.mubr.msk.f32.gmra.mrb[86].mxu0 %vm1898_vm10, %v2737_v2 }
 0xa46   : > { %v3901_v6 = vpop.f32.mrb[72].mxu0 }
 0xa47   : > { %v2871_v12 = vadd.f32 %v3901_v6, %v3355_v49  ;;  %v2865_v60 = vpop.f32.mrb[73].mxu0 }
 0xa48   : > { %v2866_v21 = vadd.f32 %v3355_v49, %v2865_v60 }
 0xa49   : > { %v2945_v62 = vmax.f32 %v2871_v12, 0.0 }
 0xa4a   : > { %v2944_v18 = vmax.f32 %v2866_v21, 0.0 }
 0xa4b   : > { %2961 = vst.msk [vmem:[%s5673_s29 + $0x8] sm:$0xff] %vm1273_vm12, %v2945_v62  ;;  %v3904_v1 = vpop.f32.mrb[74].mxu0 }
 0xa4c   : > { %2960 = vst.msk [vmem:[%s5673_s29] sm:$0xff] %vm1273_vm12, %v2944_v18  ;;  %v2881_v14 = vadd.f32 %v3904_v1, %v3355_v49  ;;  %v2875_v41 = vpop.f32.mrb[75].mxu0 }
 0xa4d   : > { %v2876_v23 = vadd.f32 %v3355_v49, %v2875_v41 }
 0xa4e   : > { %v2947_v4 = vmax.f32 %v2881_v14, 0.0 }
 0xa4f   : > { %v2946_v44 = vmax.f32 %v2876_v23, 0.0  ;;  %v3907_v40 = vpop.f32.mrb[76].mxu0 }
 0xa50   : > { %2963 = vst.msk [vmem:[%s5673_s29 + $0x18] sm:$0xff] %vm1273_vm12, %v2947_v4  ;;  %v2891_v59 = vadd.f32 %v3907_v40, %v3355_v49  ;;  %v2885_v25 = vpop.f32.mrb[77].mxu0 }
 0xa51   : > { %2962 = vst.msk [vmem:[%s5673_s29 + $0x10] sm:$0xff] %vm1273_vm12, %v2946_v44  ;;  %v2886_v39 = vadd.f32 %v3355_v49, %v2885_v25 }
 0xa52   : > { %v2949_v52 = vmax.f32 %v2891_v59, 0.0 }
 0xa53   : > { %v2948_v37 = vmax.f32 %v2886_v39, 0.0  ;;  %v3910_v9 = vpop.f32.mrb[78].mxu0 }
 0xa54   : > { %2965 = vst.msk [vmem:[%s5673_s29 + $0x28] sm:$0xff] %vm1273_vm12, %v2949_v52  ;;  %v2901_v55 = vadd.f32 %v3910_v9, %v3355_v49  ;;  %v2895_v34 = vpop.f32.mrb[79].mxu0 }
 0xa55   : > { %2964 = vst.msk [vmem:[%s5673_s29 + $0x20] sm:$0xff] %vm1273_vm12, %v2948_v37  ;;  %v2896_v47 = vadd.f32 %v3355_v49, %v2895_v34 }
 0xa56   : > { %v2951_v19 = vmax.f32 %v2901_v55, 0.0 }
 0xa57   : > { %v2950_v20 = vmax.f32 %v2896_v47, 0.0  ;;  %v3913_v32 = vpop.f32.mrb[80].mxu0 }
 0xa58   : > { %2967 = vst.msk [vmem:[%s5673_s29 + $0x38] sm:$0xff] %vm1273_vm12, %v2951_v19  ;;  %v2911_v48 = vadd.f32 %v3913_v32, %v3355_v49  ;;  %v2905_v22 = vpop.f32.mrb[81].mxu0 }
 0xa59   : > { %2966 = vst.msk [vmem:[%s5673_s29 + $0x30] sm:$0xff] %vm1273_vm12, %v2950_v20  ;;  %v2906_v50 = vadd.f32 %v3355_v49, %v2905_v22 }
 0xa5a   : > { %v2953_v61 = vmax.f32 %v2911_v48, 0.0 }
 0xa5b   : > { %v2952_v36 = vmax.f32 %v2906_v50, 0.0  ;;  %v3916_v33 = vpop.f32.mrb[82].mxu0 }
 0xa5c   : > { %2969 = vst.msk [vmem:[%s5673_s29 + $0x48] sm:$0xff] %vm1273_vm12, %v2953_v61  ;;  %v2921_v24 = vadd.f32 %v3916_v33, %v3355_v49  ;;  %v2915_v53 = vpop.f32.mrb[83].mxu0 }
 0xa5d   : > { %2968 = vst.msk [vmem:[%s5673_s29 + $0x40] sm:$0xff] %vm1273_vm12, %v2952_v36  ;;  %v2916_v30 = vadd.f32 %v3355_v49, %v2915_v53 }
 0xa5e   : > { %v2955_v8 = vmax.f32 %v2921_v24, 0.0 }
 0xa5f   : > { %v2954_v35 = vmax.f32 %v2916_v30, 0.0  ;;  %v3919_v43 = vpop.f32.mrb[84].mxu0 }
 0xa60   : > { %2971 = vst.msk [vmem:[%s5673_s29 + $0x58] sm:$0xff] %vm1273_vm12, %v2955_v8  ;;  %v2931_v15 = vadd.f32 %v3919_v43, %v3355_v49  ;;  %v2925_v31 = vpop.f32.mrb[85].mxu0 }
 0xa61   : > { %2970 = vst.msk [vmem:[%s5673_s29 + $0x50] sm:$0xff] %vm1273_vm12, %v2954_v35  ;;  %v2926_v28 = vadd.f32 %v3355_v49, %v2925_v31 }
 0xa62   : > { %v2957_v46 = vmax.f32 %v2931_v15, 0.0 }
 0xa63   : > { %v2956_v54 = vmax.f32 %v2926_v28, 0.0  ;;  %v3922_v57 = vpop.f32.mrb[86].mxu0 }
 0xa64   : > { %2973 = vst.msk [vmem:[%s5673_s29 + $0x68] sm:$0xff] %vm1273_vm12, %v2957_v46  ;;  %v2941_v13 = vadd.f32 %v3922_v57, %v3355_v49  ;;  %v2935_v7 = vpop.f32.mrb[87].mxu0 }
 0xa65   : > { %2972 = vst.msk [vmem:[%s5673_s29 + $0x60] sm:$0xff] %vm1273_vm12, %v2956_v54  ;;  %v2936_v63 = vadd.f32 %v3355_v49, %v2935_v7 }
 0xa66   : > { %v2959_v26 = vmax.f32 %v2941_v13, 0.0 }
 0xa67   : > { %v2958_v0 = vmax.f32 %v2936_v63, 0.0 }
 0xa68   : > { %2975 = vst.msk [vmem:[%s5673_s29 + $0x78] sm:$0xff] %vm1273_vm12, %v2959_v26 }
 0xa69   : > { %2974 = vst.msk [vmem:[%s5673_s29 + $0x70] sm:$0xff] %vm1273_vm12, %v2958_v0 }
 0xa6a PF: > { %s21_s11 = sadd.s32 1, %s4345_s11  }
 0xa6b   : > { %p18_p4 = scmp.ge.s32.totalorder %s21_s11, 4  }
 0xa6d   :  { %20 = sbr.rel (!%p18_p4) target bundleno = 3 (0x3), region = 92 }

</bundles_post_ra>
